<compile_context>
chip_gen: v6e
topology: v6e:2x2x1
jax: 0.10.0
libtpu: 0.0.40
codegen_flags: <defaults>
</compile_context>

<pallas_src>
import jax
import jax.numpy as jnp
from jax.experimental import pallas as pl
from jax.experimental.pallas import tpu as pltpu

_LANE = 128  # lane-dense padding of the class dimension of the output


def siamese_kernel(x1_ref, x2_ref, adj1_ref, adj2_ref,
                   w1t_ref, b1_ref, w2t_ref, b2_ref,
                   att1_ref, att2_ref, wf1_ref, wf2_ref, bf_ref,
                   out_ref):
    BT = x1_ref.shape[0]             # graph pairs handled in this grid step
    G = 2 * BT                       # both siamese branches fused into one batch

    def bmm(a, b):                   # batched (g,n,k)@(g,k,m) on the MXU
        return jnp.einsum('bij,bjk->bik', a, b,
                          preferred_element_type=jnp.float32)

    def rep(w, g):                   # resident 2-D weight -> batched operand
        return jnp.broadcast_to(w, (g,) + w.shape)

    def node_softmax(a):             # softmax over the node (channel) axis
        m = jnp.max(a, axis=1, keepdims=True)
        e = jnp.exp(a - m)
        s = jnp.sum(e, axis=1, keepdims=True)
        return e * pl.reciprocal(s, approx=True)   # divide -> EUP slot

    # Fuse branch 1 and branch 2 along the (major) graph axis: one batched
    # compute over 2*BT graphs per grid step instead of two branch passes.
    xs = jnp.concatenate([x1_ref[...], x2_ref[...]], axis=0)        # (G, N, F)
    adjs = jnp.concatenate([adj1_ref[...], adj2_ref[...]], axis=0)  # (G, N, N)

    # Broadcast each resident weight exactly once (no per-op re-broadcast).
    w1 = rep(w1t_ref[...], G)
    w2 = rep(w2t_ref[...], G)
    at1 = rep(att1_ref[...], G)
    at2 = rep(att2_ref[...], G)

    # GraphConvolution 1 + ReLU:  relu(adj @ (x @ W1^T + b1))
    h = jnp.maximum(bmm(adjs, bmm(xs, w1) + b1_ref[...]), 0.0)
    # SplitAttention 1 (groups=1):  h * softmax_nodes((a2 @ a1) @ h)
    h = h * node_softmax(bmm(at1, h))
    # GraphConvolution 2 + ReLU
    h = jnp.maximum(bmm(adjs, bmm(h, w2) + b2_ref[...]), 0.0)
    # SplitAttention 2:  h * softmax_nodes((c2 @ c1) @ h)
    h = h * node_softmax(bmm(at2, h))

    # fc(concat([h1, h2], dim=1)) == h1 @ Wfc[:, :nout]^T + h2 @ Wfc[:, nout:]^T + b
    # against the two resident lane-dense (nout, 128) weight halves.
    h1 = h[:BT]
    h2 = h[BT:]
    out = (bmm(h1, rep(wf1_ref[...], BT))
           + bmm(h2, rep(wf2_ref[...], BT))
           + bf_ref[...])
    out_ref[...] = out                                              # (BT, N, 128)


def siamese_forward(x1, adj1, x2, adj2, p, *, pairs_per_step=8):
    B, N, F = x1.shape
    H = p["w1t"].shape[1]
    O = p["w2t"].shape[1]
    nclass = p["bf"].shape[-1]
    # The reference SplitAttention (groups=1 on a 2-D per-graph feature matrix)
    # only type-checks when N == nhid == nout — assert it up front.
    assert N == H == O, "SplitAttention requires N == nhid == nout"
    BT = min(pairs_per_step, B)
    assert B % BT == 0, "batch must be a multiple of pairs_per_step"

    # Host-side weight prep (once per call):
    #  * fold the two 1x1-conv attention matmuls: a2 @ (a1 @ h) == (a2 @ a1) @ h
    #  * zero-pad the fc-weight halves / bias to 128 lanes (lane-dense output)
    att1 = jnp.dot(p["a2"], p["a1"])
    att2 = jnp.dot(p["c2"], p["c1"])
    wf1 = jnp.zeros((O, _LANE), jnp.float32).at[:, :nclass].set(p["wf1t"])
    wf2 = jnp.zeros((O, _LANE), jnp.float32).at[:, :nclass].set(p["wf2t"])
    bf = jnp.zeros((1, _LANE), jnp.float32).at[:, :nclass].set(p["bf"])

    stream3 = lambda i: (i, 0, 0)   # new block every grid step (x / adj / out)
    keep2d = lambda i: (0, 0)       # constant block index -> weight stays resident

    out_padded = pl.pallas_call(
        siamese_kernel,
        out_shape=jax.ShapeDtypeStruct((B, N, _LANE), jnp.float32),
        grid=(B // BT,),
        in_specs=[
            pl.BlockSpec((BT, N, F), stream3),     # x1
            pl.BlockSpec((BT, N, F), stream3),     # x2
            pl.BlockSpec((BT, N, N), stream3),     # adj1
            pl.BlockSpec((BT, N, N), stream3),     # adj2
            pl.BlockSpec((F, H), keep2d),          # gc1 weight (pre-transposed)
            pl.BlockSpec((1, H), keep2d),          # gc1 bias
            pl.BlockSpec((H, O), keep2d),          # gc2 weight (pre-transposed)
            pl.BlockSpec((1, O), keep2d),          # gc2 bias
            pl.BlockSpec((N, N), keep2d),          # att1 = a2 @ a1
            pl.BlockSpec((N, N), keep2d),          # att2 = c2 @ c1
            pl.BlockSpec((O, _LANE), keep2d),      # fc weight half 1 (padded)
            pl.BlockSpec((O, _LANE), keep2d),      # fc weight half 2 (padded)
            pl.BlockSpec((1, _LANE), keep2d),      # fc bias (padded)
        ],
        out_specs=pl.BlockSpec((BT, N, _LANE), stream3),
        compiler_params=pltpu.CompilerParams(
            dimension_semantics=("parallel",),     # pairs independent -> v7x megacore
        ),
    )(x1, x2, adj1, adj2,
      p["w1t"], p["b1"], p["w2t"], p["b2"], att1, att2, wf1, wf2, bf)

    # Drop the lane padding; real logits are the first `nclass` columns.
    return out_padded[..., :nclass]


def init_params(key, nfeat, nhid, nout, nclass):
    """Deterministic PyTorch-style uniform(+-1/sqrt(fan_in)) init (demo only,
    not bit-faithful to torch); Linear weights stored pre-transposed."""
    ks = jax.random.split(key, 11)

    def u(k, fan_in, shape):
        b = 1.0 / jnp.sqrt(jnp.float32(fan_in))
        return jax.random.uniform(k, shape, jnp.float32, -b, b)

    return {
        # gc1: Linear(nfeat, nhid) -> W^T (nfeat, nhid), bias (1, nhid)
        "w1t": u(ks[0], nfeat, (nfeat, nhid)),
        "b1":  u(ks[1], nfeat, (1, nhid)),
        # gc2: Linear(nhid, nout)
        "w2t": u(ks[2], nhid, (nhid, nout)),
        "b2":  u(ks[3], nhid, (1, nout)),
        # att1: two Conv1d(nhid, nhid, 1, bias=False) -> (nhid, nhid) matrices
        "a1":  u(ks[4], nhid, (nhid, nhid)),
        "a2":  u(ks[5], nhid, (nhid, nhid)),
        # att2: two Conv1d(nout, nout, 1, bias=False)
        "c1":  u(ks[6], nout, (nout, nout)),
        "c2":  u(ks[7], nout, (nout, nout)),
        # fc: Linear(2*nout, nclass) split into the halves acting on h1 / h2
        "wf1t": u(ks[8], 2 * nout, (nout, nclass)),
        "wf2t": u(ks[9], 2 * nout, (nout, nclass)),
        "bf":   u(ks[10], 2 * nout, (1, nclass)),
    }


def reference_forward(x1, adj1, x2, adj2, p):
    """Pure-JAX (unfused) reference with the module's semantics, for validation."""
    def branch(x, adj):
        h = jax.nn.relu(adj @ (x @ p["w1t"] + p["b1"]))
        h = h * jax.nn.softmax(p["a2"] @ (p["a1"] @ h), axis=1)
        h = jax.nn.relu(adj @ (h @ p["w2t"] + p["b2"]))
        h = h * jax.nn.softmax(p["c2"] @ (p["c1"] @ h), axis=1)
        return h

    h1 = branch(x1, adj1)
    h2 = branch(x2, adj2)
    return h1 @ p["wf1t"] + h2 @ p["wf2t"] + p["bf"]


if __name__ == "__main__":
    # Small shapes; N == nhid == nout is required by the reference SplitAttention.
    B, N, nfeat, nhid, nout, nclass = 32, 8, 4, 8, 8, 3

    key = jax.random.PRNGKey(0)
    k_x1, k_a1, k_x2, k_a2, k_p = jax.random.split(key, 5)

    x1 = jax.random.normal(k_x1, (B, N, nfeat), jnp.float32)
    x2 = jax.random.normal(k_x2, (B, N, nfeat), jnp.float32)

    def make_adj(k):
        # Dense "sparse" adjacencies (self-loops, row-normalized) — torch.spmm
        # is realized as a dense matmul.
        a = (jax.random.uniform(k, (B, N, N), jnp.float32) > 0.5).astype(jnp.float32)
        a = a + jnp.eye(N, dtype=jnp.float32)[None]
        return a / jnp.sum(a, axis=-1, keepdims=True)

    adj1 = make_adj(k_a1)
    adj2 = make_adj(k_a2)

    params = init_params(k_p, nfeat, nhid, nout, nclass)

    fwd = jax.jit(siamese_forward)
    out = jax.block_until_ready(fwd(x1, adj1, x2, adj2, params))

    ref = reference_forward(x1, adj1, x2, adj2, params)
    assert out.shape == (B, N, nclass)
    # Tolerance slightly looser than f32-exact: the kernel uses the EUP
    # approximate reciprocal in the softmax and pre-folded (a2@a1 / c2@c1)
    # attention weights.
    assert jnp.allclose(out, ref, atol=2e-3, rtol=2e-2), \
        "Pallas kernel mismatch vs reference"

    # TODO(synk): the reference class's unused Keras-style `model()` method is not translated.
    print("KERNEL_OK")
</pallas_src>

<mosaic_0001>
module attributes {stable_mosaic.version = 11 : i64} {
  func.func @siamese_kernel(%arg0: i32, %arg1: memref<8x8x4xf32, #tpu.memory_space<vmem>>, %arg2: memref<8x8x4xf32, #tpu.memory_space<vmem>>, %arg3: memref<8x8x8xf32, #tpu.memory_space<vmem>>, %arg4: memref<8x8x8xf32, #tpu.memory_space<vmem>>, %arg5: memref<4x8xf32, #tpu.memory_space<vmem>>, %arg6: memref<1x8xf32, #tpu.memory_space<vmem>>, %arg7: memref<8x8xf32, #tpu.memory_space<vmem>>, %arg8: memref<1x8xf32, #tpu.memory_space<vmem>>, %arg9: memref<8x8xf32, #tpu.memory_space<vmem>>, %arg10: memref<8x8xf32, #tpu.memory_space<vmem>>, %arg11: memref<8x128xf32, #tpu.memory_space<vmem>>, %arg12: memref<8x128xf32, #tpu.memory_space<vmem>>, %arg13: memref<1x128xf32, #tpu.memory_space<vmem>>, %arg14: memref<8x8x128xf32, #tpu.memory_space<vmem>>) attributes {dimension_semantics = [#tpu.dimension_semantics<parallel>], iteration_bounds = array<i64: 4>, scalar_prefetch = 0 : i64, scratch_operands = 0 : i64, tpu.core_type = #tpu.core_type<tc>, window_params = [{transform_indices = @transform_0, window_bounds = array<i64: 8, 8, 4>}, {transform_indices = @transform_1, window_bounds = array<i64: 8, 8, 4>}, {transform_indices = @transform_2, window_bounds = array<i64: 8, 8, 8>}, {transform_indices = @transform_3, window_bounds = array<i64: 8, 8, 8>}, {pipeline_mode = #tpu.pipeline_mode<synchronous>, transform_indices = @transform_4, window_bounds = array<i64: 4, 8>}, {pipeline_mode = #tpu.pipeline_mode<synchronous>, transform_indices = @transform_5, window_bounds = array<i64: 1, 8>}, {pipeline_mode = #tpu.pipeline_mode<synchronous>, transform_indices = @transform_6, window_bounds = array<i64: 8, 8>}, {pipeline_mode = #tpu.pipeline_mode<synchronous>, transform_indices = @transform_7, window_bounds = array<i64: 1, 8>}, {pipeline_mode = #tpu.pipeline_mode<synchronous>, transform_indices = @transform_8, window_bounds = array<i64: 8, 8>}, {pipeline_mode = #tpu.pipeline_mode<synchronous>, transform_indices = @transform_9, window_bounds = array<i64: 8, 8>}, {pipeline_mode = #tpu.pipeline_mode<synchronous>, transform_indices = @transform_10, window_bounds = array<i64: 8, 128>}, {pipeline_mode = #tpu.pipeline_mode<synchronous>, transform_indices = @transform_11, window_bounds = array<i64: 8, 128>}, {pipeline_mode = #tpu.pipeline_mode<synchronous>, transform_indices = @transform_12, window_bounds = array<i64: 1, 128>}, {transform_indices = @transform_13, window_bounds = array<i64: 8, 8, 128>}]} {
    %c0 = arith.constant 0 : index
    %c0_0 = arith.constant 0 : index
    %c0_1 = arith.constant 0 : index
    %0 = vector.load %arg1[%c0, %c0_0, %c0_1] : memref<8x8x4xf32, #tpu.memory_space<vmem>>, vector<8x8x4xf32>
    %c0_2 = arith.constant 0 : index
    %c0_3 = arith.constant 0 : index
    %c0_4 = arith.constant 0 : index
    %1 = vector.load %arg2[%c0_2, %c0_3, %c0_4] : memref<8x8x4xf32, #tpu.memory_space<vmem>>, vector<8x8x4xf32>
    %2 = tpu.concatenate %0, %1 in 0 : vector<8x8x4xf32>, vector<8x8x4xf32> -> vector<16x8x4xf32>
    %c0_5 = arith.constant 0 : index
    %c0_6 = arith.constant 0 : index
    %c0_7 = arith.constant 0 : index
    %3 = vector.load %arg3[%c0_5, %c0_6, %c0_7] : memref<8x8x8xf32, #tpu.memory_space<vmem>>, vector<8x8x8xf32>
    %c0_8 = arith.constant 0 : index
    %c0_9 = arith.constant 0 : index
    %c0_10 = arith.constant 0 : index
    %4 = vector.load %arg4[%c0_8, %c0_9, %c0_10] : memref<8x8x8xf32, #tpu.memory_space<vmem>>, vector<8x8x8xf32>
    %5 = tpu.concatenate %3, %4 in 0 : vector<8x8x8xf32>, vector<8x8x8xf32> -> vector<16x8x8xf32>
    %c0_11 = arith.constant 0 : index
    %c0_12 = arith.constant 0 : index
    %6 = vector.load %arg5[%c0_11, %c0_12] : memref<4x8xf32, #tpu.memory_space<vmem>>, vector<4x8xf32>
    %7 = vector.shape_cast %6 : vector<4x8xf32> to vector<1x4x8xf32>
    %8 = vector.broadcast %7 : vector<1x4x8xf32> to vector<16x4x8xf32>
    %c0_13 = arith.constant 0 : index
    %c0_14 = arith.constant 0 : index
    %9 = vector.load %arg7[%c0_13, %c0_14] : memref<8x8xf32, #tpu.memory_space<vmem>>, vector<8x8xf32>
    %10 = vector.shape_cast %9 : vector<8x8xf32> to vector<1x8x8xf32>
    %11 = vector.broadcast %10 : vector<1x8x8xf32> to vector<16x8x8xf32>
    %c0_15 = arith.constant 0 : index
    %c0_16 = arith.constant 0 : index
    %12 = vector.load %arg9[%c0_15, %c0_16] : memref<8x8xf32, #tpu.memory_space<vmem>>, vector<8x8xf32>
    %13 = vector.shape_cast %12 : vector<8x8xf32> to vector<1x8x8xf32>
    %14 = vector.broadcast %13 : vector<1x8x8xf32> to vector<16x8x8xf32>
    %c0_17 = arith.constant 0 : index
    %c0_18 = arith.constant 0 : index
    %15 = vector.load %arg10[%c0_17, %c0_18] : memref<8x8xf32, #tpu.memory_space<vmem>>, vector<8x8xf32>
    %16 = vector.shape_cast %15 : vector<8x8xf32> to vector<1x8x8xf32>
    %17 = vector.broadcast %16 : vector<1x8x8xf32> to vector<16x8x8xf32>
    "tpu.trace_start"() <{level = 10 : i32, message = "bij,bjk->bik"}> : () -> ()
    %cst = arith.constant dense<0.000000e+00> : vector<16x8x8xf32>
    %18 = tpu.matmul %2, %8, %cst {dimension_numbers = #tpu.dot_dimension_numbers<[2], [1], [1], [2], [0, 0, 0, 1, 1, 2], [0], [0]>} : vector<16x8x4xf32>, vector<16x4x8xf32>, vector<16x8x8xf32> -> vector<16x8x8xf32>
    "tpu.trace_stop"() : () -> ()
    %c0_19 = arith.constant 0 : index
    %c0_20 = arith.constant 0 : index
    %19 = vector.load %arg6[%c0_19, %c0_20] : memref<1x8xf32, #tpu.memory_space<vmem>>, vector<1x8xf32>
    %20 = vector.shape_cast %19 : vector<1x8xf32> to vector<1x1x8xf32>
    %21 = vector.broadcast %20 : vector<1x1x8xf32> to vector<16x8x8xf32>
    %22 = arith.addf %18, %21 : vector<16x8x8xf32>
    "tpu.trace_start"() <{level = 10 : i32, message = "bij,bjk->bik"}> : () -> ()
    %cst_21 = arith.constant dense<0.000000e+00> : vector<16x8x8xf32>
    %23 = tpu.matmul %5, %22, %cst_21 {dimension_numbers = #tpu.dot_dimension_numbers<[2], [1], [1], [2], [0, 0, 0, 1, 1, 2], [0], [0]>} : vector<16x8x8xf32>, vector<16x8x8xf32>, vector<16x8x8xf32> -> vector<16x8x8xf32>
    "tpu.trace_stop"() : () -> ()
    %cst_22 = arith.constant 0.000000e+00 : f32
    %24 = vector.broadcast %cst_22 : f32 to vector<16x8x8xf32>
    %25 = arith.maximumf %23, %24 : vector<16x8x8xf32>
    "tpu.trace_start"() <{level = 10 : i32, message = "bij,bjk->bik"}> : () -> ()
    %cst_23 = arith.constant dense<0.000000e+00> : vector<16x8x8xf32>
    %26 = tpu.matmul %14, %25, %cst_23 {dimension_numbers = #tpu.dot_dimension_numbers<[2], [1], [1], [2], [0, 0, 0, 1, 1, 2], [0], [0]>} : vector<16x8x8xf32>, vector<16x8x8xf32>, vector<16x8x8xf32> -> vector<16x8x8xf32>
    "tpu.trace_stop"() : () -> ()
    %cst_24 = arith.constant dense<0xFF800000> : vector<16x8xf32>
    %27 = vector.multi_reduction <maximumf>, %26, %cst_24 [1] : vector<16x8x8xf32> to vector<16x8xf32>
    %28 = vector.shape_cast %27 : vector<16x8xf32> to vector<16x1x8xf32>
    %29 = vector.broadcast %28 : vector<16x1x8xf32> to vector<16x8x8xf32>
    %30 = arith.subf %26, %29 : vector<16x8x8xf32>
    %31 = math.exp %30 : vector<16x8x8xf32>
    %cst_25 = arith.constant dense<0.000000e+00> : vector<16x8xf32>
    %32 = vector.multi_reduction <add>, %31, %cst_25 [1] : vector<16x8x8xf32> to vector<16x8xf32>
    %33 = vector.shape_cast %32 : vector<16x8xf32> to vector<16x1x8xf32>
    %34 = tpu.reciprocal %33 {approx = true} : vector<16x1x8xf32> -> vector<16x1x8xf32>
    %35 = vector.broadcast %34 : vector<16x1x8xf32> to vector<16x8x8xf32>
    %36 = arith.mulf %31, %35 : vector<16x8x8xf32>
    %37 = arith.mulf %25, %36 : vector<16x8x8xf32>
    "tpu.trace_start"() <{level = 10 : i32, message = "bij,bjk->bik"}> : () -> ()
    %cst_26 = arith.constant dense<0.000000e+00> : vector<16x8x8xf32>
    %38 = tpu.matmul %37, %11, %cst_26 {dimension_numbers = #tpu.dot_dimension_numbers<[2], [1], [1], [2], [0, 0, 0, 1, 1, 2], [0], [0]>} : vector<16x8x8xf32>, vector<16x8x8xf32>, vector<16x8x8xf32> -> vector<16x8x8xf32>
    "tpu.trace_stop"() : () -> ()
    %c0_27 = arith.constant 0 : index
    %c0_28 = arith.constant 0 : index
    %39 = vector.load %arg8[%c0_27, %c0_28] : memref<1x8xf32, #tpu.memory_space<vmem>>, vector<1x8xf32>
    %40 = vector.shape_cast %39 : vector<1x8xf32> to vector<1x1x8xf32>
    %41 = vector.broadcast %40 : vector<1x1x8xf32> to vector<16x8x8xf32>
    %42 = arith.addf %38, %41 : vector<16x8x8xf32>
    "tpu.trace_start"() <{level = 10 : i32, message = "bij,bjk->bik"}> : () -> ()
    %cst_29 = arith.constant dense<0.000000e+00> : vector<16x8x8xf32>
    %43 = tpu.matmul %5, %42, %cst_29 {dimension_numbers = #tpu.dot_dimension_numbers<[2], [1], [1], [2], [0, 0, 0, 1, 1, 2], [0], [0]>} : vector<16x8x8xf32>, vector<16x8x8xf32>, vector<16x8x8xf32> -> vector<16x8x8xf32>
    "tpu.trace_stop"() : () -> ()
    %cst_30 = arith.constant 0.000000e+00 : f32
    %44 = vector.broadcast %cst_30 : f32 to vector<16x8x8xf32>
    %45 = arith.maximumf %43, %44 : vector<16x8x8xf32>
    "tpu.trace_start"() <{level = 10 : i32, message = "bij,bjk->bik"}> : () -> ()
    %cst_31 = arith.constant dense<0.000000e+00> : vector<16x8x8xf32>
    %46 = tpu.matmul %17, %45, %cst_31 {dimension_numbers = #tpu.dot_dimension_numbers<[2], [1], [1], [2], [0, 0, 0, 1, 1, 2], [0], [0]>} : vector<16x8x8xf32>, vector<16x8x8xf32>, vector<16x8x8xf32> -> vector<16x8x8xf32>
    "tpu.trace_stop"() : () -> ()
    %cst_32 = arith.constant dense<0xFF800000> : vector<16x8xf32>
    %47 = vector.multi_reduction <maximumf>, %46, %cst_32 [1] : vector<16x8x8xf32> to vector<16x8xf32>
    %48 = vector.shape_cast %47 : vector<16x8xf32> to vector<16x1x8xf32>
    %49 = vector.broadcast %48 : vector<16x1x8xf32> to vector<16x8x8xf32>
    %50 = arith.subf %46, %49 : vector<16x8x8xf32>
    %51 = math.exp %50 : vector<16x8x8xf32>
    %cst_33 = arith.constant dense<0.000000e+00> : vector<16x8xf32>
    %52 = vector.multi_reduction <add>, %51, %cst_33 [1] : vector<16x8x8xf32> to vector<16x8xf32>
    %53 = vector.shape_cast %52 : vector<16x8xf32> to vector<16x1x8xf32>
    %54 = tpu.reciprocal %53 {approx = true} : vector<16x1x8xf32> -> vector<16x1x8xf32>
    %55 = vector.broadcast %54 : vector<16x1x8xf32> to vector<16x8x8xf32>
    %56 = arith.mulf %51, %55 : vector<16x8x8xf32>
    %57 = arith.mulf %45, %56 : vector<16x8x8xf32>
    %58 = vector.extract_strided_slice %57 {offsets = [0, 0, 0], sizes = [8, 8, 8], strides = [1, 1, 1]} : vector<16x8x8xf32> to vector<8x8x8xf32>
    %59 = vector.extract_strided_slice %57 {offsets = [8, 0, 0], sizes = [8, 8, 8], strides = [1, 1, 1]} : vector<16x8x8xf32> to vector<8x8x8xf32>
    %c0_34 = arith.constant 0 : index
    %c0_35 = arith.constant 0 : index
    %60 = vector.load %arg11[%c0_34, %c0_35] : memref<8x128xf32, #tpu.memory_space<vmem>>, vector<8x128xf32>
    %61 = vector.shape_cast %60 : vector<8x128xf32> to vector<1x8x128xf32>
    %62 = vector.broadcast %61 : vector<1x8x128xf32> to vector<8x8x128xf32>
    "tpu.trace_start"() <{level = 10 : i32, message = "bij,bjk->bik"}> : () -> ()
    %cst_36 = arith.constant dense<0.000000e+00> : vector<8x8x128xf32>
    %63 = tpu.matmul %58, %62, %cst_36 {dimension_numbers = #tpu.dot_dimension_numbers<[2], [1], [1], [2], [0, 0, 0, 1, 1, 2], [0], [0]>} : vector<8x8x8xf32>, vector<8x8x128xf32>, vector<8x8x128xf32> -> vector<8x8x128xf32>
    "tpu.trace_stop"() : () -> ()
    %c0_37 = arith.constant 0 : index
    %c0_38 = arith.constant 0 : index
    %64 = vector.load %arg12[%c0_37, %c0_38] : memref<8x128xf32, #tpu.memory_space<vmem>>, vector<8x128xf32>
    %65 = vector.shape_cast %64 : vector<8x128xf32> to vector<1x8x128xf32>
    %66 = vector.broadcast %65 : vector<1x8x128xf32> to vector<8x8x128xf32>
    "tpu.trace_start"() <{level = 10 : i32, message = "bij,bjk->bik"}> : () -> ()
    %cst_39 = arith.constant dense<0.000000e+00> : vector<8x8x128xf32>
    %67 = tpu.matmul %59, %66, %cst_39 {dimension_numbers = #tpu.dot_dimension_numbers<[2], [1], [1], [2], [0, 0, 0, 1, 1, 2], [0], [0]>} : vector<8x8x8xf32>, vector<8x8x128xf32>, vector<8x8x128xf32> -> vector<8x8x128xf32>
    "tpu.trace_stop"() : () -> ()
    %68 = arith.addf %63, %67 : vector<8x8x128xf32>
    %c0_40 = arith.constant 0 : index
    %c0_41 = arith.constant 0 : index
    %69 = vector.load %arg13[%c0_40, %c0_41] : memref<1x128xf32, #tpu.memory_space<vmem>>, vector<1x128xf32>
    %70 = vector.shape_cast %69 : vector<1x128xf32> to vector<1x1x128xf32>
    %71 = vector.broadcast %70 : vector<1x1x128xf32> to vector<8x8x128xf32>
    %72 = arith.addf %68, %71 : vector<8x8x128xf32>
    %c0_42 = arith.constant 0 : index
    %c0_43 = arith.constant 0 : index
    %c0_44 = arith.constant 0 : index
    %73 = vector.load %arg14[%c0_42, %c0_43, %c0_44] : memref<8x8x128xf32, #tpu.memory_space<vmem>>, vector<8x8x128xf32>
    tpu.vector_store %arg14[%c0_42, %c0_43, %c0_44], %72 {strides = array<i32>} : memref<8x8x128xf32, #tpu.memory_space<vmem>>, vector<8x8x128xf32>,
    return
  }
  func.func @transform_0(%arg0: i32) -> (i32, i32, i32) {
    %c0_i32 = arith.constant 0 : i32
    %c0_i32_0 = arith.constant 0 : i32
    %c0_i32_1 = arith.constant 0 : i32
    return %arg0, %c0_i32, %c0_i32_0 : i32, i32, i32
  }
  func.func @transform_1(%arg0: i32) -> (i32, i32, i32) {
    %c0_i32 = arith.constant 0 : i32
    %c0_i32_0 = arith.constant 0 : i32
    %c0_i32_1 = arith.constant 0 : i32
    return %arg0, %c0_i32, %c0_i32_0 : i32, i32, i32
  }
  func.func @transform_2(%arg0: i32) -> (i32, i32, i32) {
    %c0_i32 = arith.constant 0 : i32
    %c0_i32_0 = arith.constant 0 : i32
    %c0_i32_1 = arith.constant 0 : i32
    return %arg0, %c0_i32, %c0_i32_0 : i32, i32, i32
  }
  func.func @transform_3(%arg0: i32) -> (i32, i32, i32) {
    %c0_i32 = arith.constant 0 : i32
    %c0_i32_0 = arith.constant 0 : i32
    %c0_i32_1 = arith.constant 0 : i32
    return %arg0, %c0_i32, %c0_i32_0 : i32, i32, i32
  }
  func.func @transform_4(%arg0: i32) -> (i32, i32) {
    %c0_i32 = arith.constant 0 : i32
    %c0_i32_0 = arith.constant 0 : i32
    %c0_i32_1 = arith.constant 0 : i32
    return %c0_i32, %c0_i32_0 : i32, i32
  }
  func.func @transform_5(%arg0: i32) -> (i32, i32) {
    %c0_i32 = arith.constant 0 : i32
    %c0_i32_0 = arith.constant 0 : i32
    %c0_i32_1 = arith.constant 0 : i32
    return %c0_i32, %c0_i32_0 : i32, i32
  }
  func.func @transform_6(%arg0: i32) -> (i32, i32) {
    %c0_i32 = arith.constant 0 : i32
    %c0_i32_0 = arith.constant 0 : i32
    %c0_i32_1 = arith.constant 0 : i32
    return %c0_i32, %c0_i32_0 : i32, i32
  }
  func.func @transform_7(%arg0: i32) -> (i32, i32) {
    %c0_i32 = arith.constant 0 : i32
    %c0_i32_0 = arith.constant 0 : i32
    %c0_i32_1 = arith.constant 0 : i32
    return %c0_i32, %c0_i32_0 : i32, i32
  }
  func.func @transform_8(%arg0: i32) -> (i32, i32) {
    %c0_i32 = arith.constant 0 : i32
    %c0_i32_0 = arith.constant 0 : i32
    %c0_i32_1 = arith.constant 0 : i32
    return %c0_i32, %c0_i32_0 : i32, i32
  }
  func.func @transform_9(%arg0: i32) -> (i32, i32) {
    %c0_i32 = arith.constant 0 : i32
    %c0_i32_0 = arith.constant 0 : i32
    %c0_i32_1 = arith.constant 0 : i32
    return %c0_i32, %c0_i32_0 : i32, i32
  }
  func.func @transform_10(%arg0: i32) -> (i32, i32) {
    %c0_i32 = arith.constant 0 : i32
    %c0_i32_0 = arith.constant 0 : i32
    %c0_i32_1 = arith.constant 0 : i32
    return %c0_i32, %c0_i32_0 : i32, i32
  }
  func.func @transform_11(%arg0: i32) -> (i32, i32) {
    %c0_i32 = arith.constant 0 : i32
    %c0_i32_0 = arith.constant 0 : i32
    %c0_i32_1 = arith.constant 0 : i32
    return %c0_i32, %c0_i32_0 : i32, i32
  }
  func.func @transform_12(%arg0: i32) -> (i32, i32) {
    %c0_i32 = arith.constant 0 : i32
    %c0_i32_0 = arith.constant 0 : i32
    %c0_i32_1 = arith.constant 0 : i32
    return %c0_i32, %c0_i32_0 : i32, i32
  }
  func.func @transform_13(%arg0: i32) -> (i32, i32, i32) {
    %c0_i32 = arith.constant 0 : i32
    %c0_i32_0 = arith.constant 0 : i32
    %c0_i32_1 = arith.constant 0 : i32
    return %arg0, %c0_i32, %c0_i32_0 : i32, i32, i32
  }
}

</mosaic_0001>

<bundles_post_ra>
// kernel: siamese_forward.1
= control target key start
LH: loop header
LB: loop body
LE: loop exit
PB: predicated region body
PF: predicated region fallthrough
CT: control target
= control target key end

     0   :  { %s10559_s25 = smov 0   ;;  %s11781_s0 = inlined_call_operand.vmem [shape: f32[32,8,4], index: 0, kind: input, shape index: {}]   ;;  %s11782_s1 = inlined_call_operand.vmem [shape: f32[32,8,4], index: 1, kind: input, shape index: {}]   ;;  %s11783_s2 = inlined_call_operand.vmem [shape: f32[32,8,8], index: 2, kind: input, shape index: {}]   ;;  %s11784_s3 = inlined_call_operand.vmem [shape: f32[32,8,8], index: 3, kind: input, shape index: {}]   ;;  %s11785_s4 = inlined_call_operand.vmem [shape: f32[4,8], index: 4, kind: input, shape index: {}]   ;;  %s11786_s5 = inlined_call_operand.vmem [shape: f32[1,8], index: 5, kind: input, shape index: {}]   ;;  %s11787_s6 = inlined_call_operand.vmem [shape: f32[8,8], index: 6, kind: input, shape index: {}]   ;;  %s11788_s7 = inlined_call_operand.vmem [shape: f32[1,8], index: 7, kind: input, shape index: {}]   ;;  %s11789_s8 = inlined_call_operand.vmem [shape: f32[8,8], index: 8, kind: input, shape index: {}]   ;;  %s11790_s9 = inlined_call_operand.vmem [shape: f32[8,8], index: 9, kind: input, shape index: {}]   ;;  %s11791_s10 = inlined_call_operand.vmem [shape: f32[8,128], index: 10, kind: input, shape index: {}]   ;;  %s11792_s11 = inlined_call_operand.vmem [shape: f32[8,128], index: 11, kind: input, shape index: {}]   ;;  %s11793_s12 = inlined_call_operand.vmem [shape: f32[1,128], index: 12, kind: input, shape index: {}]   ;;  %s11794_s13 = inlined_call_operand.vmem [shape: f32[32,8,128], index: 13, kind: output, shape index: {}]  }
   0x1 LB: > { %s9393_s26 = sadd.s32 4294967295, %s10485_s25   ;;  %p9397_p0 = scmp.ge.s32.totalorder %s10485_s25, 1  ;;  %s10485_s25 = sphi %s10559_s25, %s23_s25  }
   0x2   : > { %p421_p1 = scmp.lt.s32.totalorder %s10485_s25, 5 }
   0x4   : > { %p422_p2 = pnand %p9397_p0, %p421_p1 }
   0x5   : > { %s9398_s29 = sshll.u32 (!%p422_p2), %s9393_s26, 3 }
   0x6   : > { %425 = sbr.rel (%p422_p2) target bundleno = 1584 (0x630), region = 72  ;;  %p481_p3 = scmp.lt.s32.totalorder (!%p422_p2), %s9398_s29, 31 }
   0xb   : > { %v10570_v0 = vld [vmem:[%s11785_s4] sm:$0xf]  ;;  %vm557_vm0 = vcmask 1043456   ;;  %v11822_v1 = vmov 0.0   ;;  %vm10488_vm1 = vmmov 0   ;;  %s11853_s29 = smov (!%p481_p3, %s9398_s29), 31 }
   0xc   : > { %9765 = vmatprep.subr.mxu0 %v11822_v1  ;;  %9770 = vmatprep.subr.mxu1 %v11822_v1  ;;  %s10584_s30 = sshll.u32 %s11853_s29, 3  ;;  %vm553_vm2 = vcmask 31744   ;;  %v10697_v18 = vld [vmem:[%s11786_s5] ss:$0 sm:$0xff]  ;;  %vm1726_vm3 = vcmask 64512  }
   0xd   : > { %9766 = vmatpush3.msk.msra.mxu0 %vm557_vm0, %v10570_v0  ;;  %9767 = vmatprep.mubr.msk.f32.mxu0 %vm10488_vm1, %v11822_v1  ;;  %s484_s16 = scalar_lea.vmem %s11781_s0, %s10584_s30  ;;  %s10628_s19 = scalar_lea.vmem %s11782_s1, %s10584_s30 }
   0xe   : > { %9771 = vmatpush3.msk.msra.mxu1 %vm557_vm0, %v10570_v0  ;;  %9772 = vmatprep.mubr.msk.f32.mxu1 %vm10488_vm1, %v11822_v1  ;;  %v510_v2 = vld [vmem:[%s484_s16] sm:$0xff]  ;;  %v511_v3 = vld [vmem:[%s484_s16 + $0x8] sm:$0xff]  ;;  %v512_v4 = vld [vmem:[%s484_s16 + $0x10] sm:$0xff]  ;;  %s10703_s24 = scalar_lea.vmem %s11783_s2, %s10584_s30  ;;  %s10749_s28 = scalar_lea.vmem %s11784_s3, %s10584_s30 }
   0xf   : > { %9775 = vmatprep.subr.mxu0 %v11822_v1  ;;  %9780 = vmatprep.subr.mxu1 %v11822_v1  ;;  %v513_v5 = vld [vmem:[%s484_s16 + $0x18] sm:$0xff]  ;;  %v514_v6 = vld [vmem:[%s484_s16 + $0x20] sm:$0xff]  ;;  %v515_v7 = vld [vmem:[%s484_s16 + $0x28] sm:$0xff]  ;;  %s11768_s14 = scalar_lea.vmem %s11794_s13, %s10584_s30 }
  0x10   : > { %9768 = vmatmul.mubr.msk.f32.vlgmr.msra.gmra.mxu0 %vm553_vm2, %v510_v2  ;;  %9773 = vmatmul.mubr.msk.f32.vlgmr.msra.gmra.mxu1 %vm553_vm2, %v511_v3  ;;  %v516_v8 = vld [vmem:[%s484_s16 + $0x30] sm:$0xff]  ;;  %v517_v9 = vld [vmem:[%s484_s16 + $0x38] sm:$0xff]  ;;  %v518_v10 = vld [vmem:[%s10628_s19] sm:$0xff] }
  0x11   : > { %9776 = vmatpush3.msk.msra.mxu0 %vm557_vm0, %v10570_v0  ;;  %9777 = vmatprep.mubr.msk.f32.mxu0 %vm10488_vm1, %v11822_v1  ;;  %v519_v11 = vld [vmem:[%s10628_s19 + $0x8] sm:$0xff]  ;;  %v520_v12 = vld [vmem:[%s10628_s19 + $0x10] sm:$0xff]  ;;  %v521_v13 = vld [vmem:[%s10628_s19 + $0x18] sm:$0xff] }
  0x12   : > { %9781 = vmatpush3.msk.msra.mxu1 %vm557_vm0, %v10570_v0  ;;  %9782 = vmatprep.mubr.msk.f32.mxu1 %vm10488_vm1, %v11822_v1  ;;  %v522_v14 = vld [vmem:[%s10628_s19 + $0x20] sm:$0xff]  ;;  %v523_v15 = vld [vmem:[%s10628_s19 + $0x28] sm:$0xff]  ;;  %v524_v16 = vld [vmem:[%s10628_s19 + $0x30] sm:$0xff] }
  0x13   : > { %9785 = vmatprep.subr.mxu0 %v11822_v1  ;;  %9790 = vmatprep.subr.mxu1 %v11822_v1  ;;  %v525_v17 = vld [vmem:[%s10628_s19 + $0x38] sm:$0xff]  ;;  %v526_v23 = vld [vmem:[%s10703_s24] sm:$0xff]  ;;  %v527_v24 = vld [vmem:[%s10703_s24 + $0x8] sm:$0xff] }
  0x14   : > { %9778 = vmatmul.mubr.msk.f32.vlgmr.msra.gmra.mxu0 %vm553_vm2, %v512_v4  ;;  %9783 = vmatmul.mubr.msk.f32.vlgmr.msra.gmra.mxu1 %vm553_vm2, %v513_v5  ;;  %v528_v31 = vld [vmem:[%s10703_s24 + $0x10] sm:$0xff]  ;;  %v529_v32 = vld [vmem:[%s10703_s24 + $0x18] sm:$0xff]  ;;  %v530_v39 = vld [vmem:[%s10703_s24 + $0x20] sm:$0xff] }
  0x15   : > { %9786 = vmatpush3.msk.msra.mxu0 %vm557_vm0, %v10570_v0  ;;  %9787 = vmatprep.mubr.msk.f32.mxu0 %vm10488_vm1, %v11822_v1  ;;  %v531_v40 = vld [vmem:[%s10703_s24 + $0x28] sm:$0xff]  ;;  %v532_v47 = vld [vmem:[%s10703_s24 + $0x30] sm:$0xff]  ;;  %v533_v48 = vld [vmem:[%s10703_s24 + $0x38] sm:$0xff] }
  0x16   : > { %9791 = vmatpush3.msk.msra.mxu1 %vm557_vm0, %v10570_v0  ;;  %9792 = vmatprep.mubr.msk.f32.mxu1 %vm10488_vm1, %v11822_v1  ;;  %v534_v55 = vld [vmem:[%s10749_s28] sm:$0xff]  ;;  %v535_v56 = vld [vmem:[%s10749_s28 + $0x8] sm:$0xff]  ;;  %v536_v63 = vld [vmem:[%s10749_s28 + $0x10] sm:$0xff] }
  0x17   : > { %9795 = vmatprep.subr.mxu0 %v11822_v1  ;;  %9800 = vmatprep.subr.mxu1 %v11822_v1 }
  0x18   : > { %9788 = vmatmul.mubr.msk.f32.vlgmr.msra.gmra.mxu0 %vm553_vm2, %v514_v6  ;;  %9793 = vmatmul.mubr.msk.f32.vlgmr.msra.gmra.mxu1 %vm553_vm2, %v515_v7 }
  0x19   : > { %9796 = vmatpush3.msk.msra.mxu0 %vm557_vm0, %v10570_v0  ;;  %9797 = vmatprep.mubr.msk.f32.mxu0 %vm10488_vm1, %v11822_v1 }
  0x1a   : > { %9801 = vmatpush3.msk.msra.mxu1 %vm557_vm0, %v10570_v0  ;;  %9802 = vmatprep.mubr.msk.f32.mxu1 %vm10488_vm1, %v11822_v1 }
  0x1b   : > { %9805 = vmatprep.subr.mxu0 %v11822_v1  ;;  %9810 = vmatprep.subr.mxu1 %v11822_v1 }
  0x1c   : > { %9798 = vmatmul.mubr.msk.f32.vlgmr.msra.gmra.mxu0 %vm553_vm2, %v516_v8  ;;  %9803 = vmatmul.mubr.msk.f32.vlgmr.msra.gmra.mxu1 %vm553_vm2, %v517_v9  ;;  %v538_v8 = vld [vmem:[%s10749_s28 + $0x20] sm:$0xff]  ;;  %v539_v9 = vld [vmem:[%s10749_s28 + $0x28] sm:$0xff] }
  0x1d   : > { %9806 = vmatpush3.msk.msra.mxu0 %vm557_vm0, %v10570_v0  ;;  %9807 = vmatprep.mubr.msk.f32.mxu0 %vm10488_vm1, %v11822_v1 }
  0x1e   : > { %9811 = vmatpush3.msk.msra.mxu1 %vm557_vm0, %v10570_v0  ;;  %9812 = vmatprep.mubr.msk.f32.mxu1 %vm10488_vm1, %v11822_v1 }
  0x1f   : > { %9815 = vmatprep.subr.mxu0 %v11822_v1  ;;  %9820 = vmatprep.subr.mxu1 %v11822_v1 }
  0x20   : > { %9808 = vmatmul.mubr.msk.f32.vlgmr.msra.gmra.mxu0 %vm553_vm2, %v518_v10  ;;  %9813 = vmatmul.mubr.msk.f32.vlgmr.msra.gmra.mxu1 %vm553_vm2, %v519_v11 }
  0x21   : > { %9816 = vmatpush3.msk.msra.mxu0 %vm557_vm0, %v10570_v0  ;;  %9817 = vmatprep.mubr.msk.f32.mxu0 %vm10488_vm1, %v11822_v1 }
  0x22   : > { %9821 = vmatpush3.msk.msra.mxu1 %vm557_vm0, %v10570_v0  ;;  %9822 = vmatprep.mubr.msk.f32.mxu1 %vm10488_vm1, %v11822_v1 }
  0x23   : > { %9825 = vmatprep.subr.mxu0 %v11822_v1  ;;  %9830 = vmatprep.subr.mxu1 %v11822_v1 }
  0x24   : > { %9818 = vmatmul.mubr.msk.f32.vlgmr.msra.gmra.mxu0 %vm553_vm2, %v520_v12  ;;  %9823 = vmatmul.mubr.msk.f32.vlgmr.msra.gmra.mxu1 %vm553_vm2, %v521_v13 }
  0x25   : > { %9826 = vmatpush3.msk.msra.mxu0 %vm557_vm0, %v10570_v0  ;;  %9827 = vmatprep.mubr.msk.f32.mxu0 %vm10488_vm1, %v11822_v1 }
  0x26   : > { %9831 = vmatpush3.msk.msra.mxu1 %vm557_vm0, %v10570_v0  ;;  %9832 = vmatprep.mubr.msk.f32.mxu1 %vm10488_vm1, %v11822_v1 }
  0x27   : > { %9835 = vmatprep.subr.mxu0 %v11822_v1  ;;  %9840 = vmatprep.subr.mxu1 %v11822_v1 }
  0x28   : > { %9828 = vmatmul.mubr.msk.f32.vlgmr.msra.gmra.mxu0 %vm553_vm2, %v522_v14  ;;  %9833 = vmatmul.mubr.msk.f32.vlgmr.msra.gmra.mxu1 %vm553_vm2, %v523_v15 }
  0x29   : > { %9836 = vmatpush3.msk.msra.mxu0 %vm557_vm0, %v10570_v0  ;;  %9837 = vmatprep.mubr.msk.f32.mxu0 %vm10488_vm1, %v11822_v1 }
  0x2a   : > { %9841 = vmatpush3.msk.msra.mxu1 %vm557_vm0, %v10570_v0  ;;  %9842 = vmatprep.mubr.msk.f32.mxu1 %vm10488_vm1, %v11822_v1  ;;  %v537_v0 = vld [vmem:[%s10749_s28 + $0x18] sm:$0xff] }
  0x2b   : > { %9845 = vmatprep.subr.mxu0 %v11822_v1  ;;  %9850 = vmatprep.subr.mxu1 %v11822_v1 }
  0x2c   : > { %9838 = vmatmul.mubr.msk.f32.vlgmr.msra.gmra.mxu0 %vm553_vm2, %v524_v16  ;;  %9843 = vmatmul.mubr.msk.f32.vlgmr.msra.gmra.mxu1 %vm553_vm2, %v525_v17  ;;  %v540_v16 = vld [vmem:[%s10749_s28 + $0x30] sm:$0xff]  ;;  %v541_v17 = vld [vmem:[%s10749_s28 + $0x38] sm:$0xff] }
  0x2d   : > { %9847 = vmatprep.mubr.msk.f32.mxu0 %vm10488_vm1, %v11822_v1  ;;  %9852 = vmatprep.mubr.msk.f32.mxu1 %vm10488_vm1, %v11822_v1 }
  0xd0   : > { %v627_v19 = vpop.f32.mrf.mxu0  ;;  %v700_v20 = vpop.f32.mrf.mxu1 }
  0xd1   : > { %v628_v21 = vadd.f32 %v10697_v18, %v627_v19  ;;  %v701_v22 = vadd.f32 %v10697_v18, %v700_v20 }
  0xd2   : > { %v9769_v25 = vpop.f32.mrf.mxu0  ;;  %v9774_v26 = vpop.f32.mrf.mxu1 }
  0xd3   : > { %9846 = vmatpush3.msra.mxu0 %v628_v21  ;;  %9851 = vmatpush3.msra.mxu1 %v701_v22 }
  0xd4   : > { %v773_v27 = vpop.f32.mrf.mxu0  ;;  %v846_v28 = vpop.f32.mrf.mxu1  ;;  %9848 = vmatmul.mubr.msk.f32.vlgmr.msra.gmra.mxu0 %vm1726_vm3, %v526_v23  ;;  %9853 = vmatmul.mubr.msk.f32.vlgmr.msra.gmra.mxu1 %vm1726_vm3, %v527_v24  ;;  %v10816_v24 = vld [vmem:[%s11789_s8] sm:$0xff] }
  0xd5   : > { %v774_v29 = vadd.f32 %v10697_v18, %v773_v27  ;;  %v847_v30 = vadd.f32 %v10697_v18, %v846_v28  ;;  %9855 = vmatprep.subr.mxu0 %v11822_v1  ;;  %9860 = vmatprep.subr.mxu1 %v11822_v1 }
  0xd6   : > { %v9779_v33 = vpop.f32.mrf.mxu0  ;;  %v9784_v34 = vpop.f32.mrf.mxu1  ;;  %9857 = vmatprep.mubr.msk.f32.mxu0 %vm10488_vm1, %v11822_v1  ;;  %9862 = vmatprep.mubr.msk.f32.mxu1 %vm10488_vm1, %v11822_v1 }
  0xd7   : > { %9856 = vmatpush3.msra.mxu0 %v774_v29  ;;  %9861 = vmatpush3.msra.mxu1 %v847_v30 }
  0xd8   : > { %v919_v35 = vpop.f32.mrf.mxu0  ;;  %v992_v36 = vpop.f32.mrf.mxu1  ;;  %9858 = vmatmul.mubr.msk.f32.vlgmr.msra.gmra.mxu0 %vm1726_vm3, %v528_v31  ;;  %9863 = vmatmul.mubr.msk.f32.vlgmr.msra.gmra.mxu1 %vm1726_vm3, %v529_v32 }
  0xd9   : > { %v920_v37 = vadd.f32 %v10697_v18, %v919_v35  ;;  %v993_v38 = vadd.f32 %v10697_v18, %v992_v36  ;;  %9865 = vmatprep.subr.mxu0 %v11822_v1  ;;  %9870 = vmatprep.subr.mxu1 %v11822_v1 }
  0xda   : > { %v9789_v41 = vpop.f32.mrf.mxu0  ;;  %v9794_v42 = vpop.f32.mrf.mxu1  ;;  %9867 = vmatprep.mubr.msk.f32.mxu0 %vm10488_vm1, %v11822_v1  ;;  %9872 = vmatprep.mubr.msk.f32.mxu1 %vm10488_vm1, %v11822_v1 }
  0xdb   : > { %9866 = vmatpush3.msra.mxu0 %v920_v37  ;;  %9871 = vmatpush3.msra.mxu1 %v993_v38 }
  0xdc   : > { %v1065_v43 = vpop.f32.mrf.mxu0  ;;  %v1138_v44 = vpop.f32.mrf.mxu1  ;;  %9868 = vmatmul.mubr.msk.f32.vlgmr.msra.gmra.mxu0 %vm1726_vm3, %v530_v39  ;;  %9873 = vmatmul.mubr.msk.f32.vlgmr.msra.gmra.mxu1 %vm1726_vm3, %v531_v40 }
  0xdd   : > { %v1066_v45 = vadd.f32 %v10697_v18, %v1065_v43  ;;  %v1139_v46 = vadd.f32 %v10697_v18, %v1138_v44  ;;  %9875 = vmatprep.subr.mxu0 %v11822_v1  ;;  %9880 = vmatprep.subr.mxu1 %v11822_v1 }
  0xde   : > { %v9799_v49 = vpop.f32.mrf.mxu0  ;;  %v9804_v50 = vpop.f32.mrf.mxu1  ;;  %9877 = vmatprep.mubr.msk.f32.mxu0 %vm10488_vm1, %v11822_v1  ;;  %9882 = vmatprep.mubr.msk.f32.mxu1 %vm10488_vm1, %v11822_v1 }
  0xdf   : > { %9876 = vmatpush3.msra.mxu0 %v1066_v45  ;;  %9881 = vmatpush3.msra.mxu1 %v1139_v46 }
  0xe0   : > { %v1211_v51 = vpop.f32.mrf.mxu0  ;;  %v1284_v52 = vpop.f32.mrf.mxu1  ;;  %9878 = vmatmul.mubr.msk.f32.vlgmr.msra.gmra.mxu0 %vm1726_vm3, %v532_v47  ;;  %9883 = vmatmul.mubr.msk.f32.vlgmr.msra.gmra.mxu1 %vm1726_vm3, %v533_v48 }
  0xe1   : > { %v1212_v53 = vadd.f32 %v10697_v18, %v1211_v51  ;;  %v1285_v54 = vadd.f32 %v10697_v18, %v1284_v52  ;;  %9885 = vmatprep.subr.mxu0 %v11822_v1  ;;  %9890 = vmatprep.subr.mxu1 %v11822_v1 }
  0xe2   : > { %v9809_v57 = vpop.f32.mrf.mxu0  ;;  %v9814_v58 = vpop.f32.mrf.mxu1  ;;  %9887 = vmatprep.mubr.msk.f32.mxu0 %vm10488_vm1, %v11822_v1  ;;  %9892 = vmatprep.mubr.msk.f32.mxu1 %vm10488_vm1, %v11822_v1 }
  0xe3   : > { %9886 = vmatpush3.msra.mxu0 %v1212_v53  ;;  %9891 = vmatpush3.msra.mxu1 %v1285_v54 }
  0xe4   : > { %v1357_v59 = vpop.f32.mrf.mxu0  ;;  %v1430_v60 = vpop.f32.mrf.mxu1  ;;  %9888 = vmatmul.mubr.msk.f32.vlgmr.msra.gmra.mxu0 %vm1726_vm3, %v534_v55  ;;  %9893 = vmatmul.mubr.msk.f32.vlgmr.msra.gmra.mxu1 %vm1726_vm3, %v535_v56 }
  0xe5   : > { %v1358_v61 = vadd.f32 %v10697_v18, %v1357_v59  ;;  %v1431_v62 = vadd.f32 %v10697_v18, %v1430_v60  ;;  %9895 = vmatprep.subr.mxu0 %v11822_v1  ;;  %9900 = vmatprep.subr.mxu1 %v11822_v1 }
  0xe6   : > { %v9819_v2 = vpop.f32.mrf.mxu0  ;;  %v9824_v3 = vpop.f32.mrf.mxu1  ;;  %9897 = vmatprep.mubr.msk.f32.mxu0 %vm10488_vm1, %v11822_v1  ;;  %9902 = vmatprep.mubr.msk.f32.mxu1 %vm10488_vm1, %v11822_v1 }
  0xe7   : > { %9896 = vmatpush3.msra.mxu0 %v1358_v61  ;;  %9901 = vmatpush3.msra.mxu1 %v1431_v62 }
  0xe8   : > { %v1503_v4 = vpop.f32.mrf.mxu0  ;;  %v1576_v5 = vpop.f32.mrf.mxu1  ;;  %9898 = vmatmul.mubr.msk.f32.vlgmr.msra.gmra.mxu0 %vm1726_vm3, %v536_v63  ;;  %9903 = vmatmul.mubr.msk.f32.vlgmr.msra.gmra.mxu1 %vm1726_vm3, %v537_v0 }
  0xe9   : > { %v1504_v6 = vadd.f32 %v10697_v18, %v1503_v4  ;;  %v1577_v7 = vadd.f32 %v10697_v18, %v1576_v5  ;;  %9905 = vmatprep.subr.mxu0 %v11822_v1  ;;  %9910 = vmatprep.subr.mxu1 %v11822_v1 }
  0xea   : > { %v9829_v10 = vpop.f32.mrf.mxu0  ;;  %v9834_v11 = vpop.f32.mrf.mxu1  ;;  %9907 = vmatprep.mubr.msk.f32.mxu0 %vm10488_vm1, %v11822_v1  ;;  %9912 = vmatprep.mubr.msk.f32.mxu1 %vm10488_vm1, %v11822_v1 }
  0xeb   : > { %9906 = vmatpush3.msra.mxu0 %v1504_v6  ;;  %9911 = vmatpush3.msra.mxu1 %v1577_v7  ;;  %v10975_v6 = vld [vmem:[%s11787_s6] sm:$0xff] }
  0xec   : > { %v1649_v12 = vpop.f32.mrf.mxu0  ;;  %v1722_v13 = vpop.f32.mrf.mxu1  ;;  %9908 = vmatmul.mubr.msk.f32.vlgmr.msra.gmra.mxu0 %vm1726_vm3, %v538_v8  ;;  %9913 = vmatmul.mubr.msk.f32.vlgmr.msra.gmra.mxu1 %vm1726_vm3, %v539_v9 }
  0xed   : > { %v1650_v14 = vadd.f32 %v10697_v18, %v1649_v12  ;;  %v1723_v15 = vadd.f32 %v10697_v18, %v1722_v13  ;;  %9915 = vmatprep.subr.mxu0 %v11822_v1  ;;  %9920 = vmatprep.subr.mxu1 %v11822_v1 }
  0xee   : > { %v9839_v19 = vpop.f32.mrf.mxu0  ;;  %v9844_v20 = vpop.f32.mrf.mxu1  ;;  %9917 = vmatprep.mubr.msk.f32.mxu0 %vm10488_vm1, %v11822_v1  ;;  %9922 = vmatprep.mubr.msk.f32.mxu1 %vm10488_vm1, %v11822_v1 }
  0xef   : > { %9916 = vmatpush3.msra.mxu0 %v1650_v14  ;;  %9921 = vmatpush3.msra.mxu1 %v1723_v15 }
  0xf0   : > { %9918 = vmatmul.mubr.msk.f32.vlgmr.msra.gmra.mxu0 %vm1726_vm3, %v540_v16  ;;  %9923 = vmatmul.mubr.msk.f32.vlgmr.msra.gmra.mxu1 %vm1726_vm3, %v541_v17 }
  0xf1   : > { %9925 = vmatprep.subr.mxu0 %v11822_v1  ;;  %9930 = vmatprep.subr.mxu1 %v11822_v1 }
  0xf2   : > { %9927 = vmatprep.mubr.msk.f32.mxu0 %vm10488_vm1, %v11822_v1  ;;  %9932 = vmatprep.mubr.msk.f32.mxu1 %vm10488_vm1, %v11822_v1 }
 0x194   : > { %v10807_v18 = vpop.f32.mrf.mxu0  ;;  %v10809_v21 = vpop.f32.mrf.mxu1 }
 0x195   : > { %v2895_v22 = vmax.f32 %v10807_v18, 0.0  ;;  %v2896_v23 = vmax.f32 %v10809_v21, 0.0 }
 0x196   : > { %v9849_v25 = vpop.f32.mrf.mxu0  ;;  %v9854_v26 = vpop.f32.mrf.mxu1 }
 0x197   : > { %9926 = vmatpush3.msra.mxu0 %v2895_v22  ;;  %9931 = vmatpush3.msra.mxu1 %v2896_v23 }
 0x198   : > { %v10822_v27 = vpop.f32.mrf.mxu0  ;;  %v10824_v28 = vpop.f32.mrf.mxu1  ;;  %9928 = vmatmul.mubr.msk.f32.vlgmr.msra.gmra.mxu0 %vm1726_vm3, %v10816_v24  ;;  %9933 = vmatmul.mubr.msk.f32.vlgmr.msra.gmra.mxu1 %vm1726_vm3, %v10816_v24 }
 0x199   : > { %v2897_v29 = vmax.f32 %v10822_v27, 0.0  ;;  %v11807_v30 = vmax.f32 %v10824_v28, 0.0  ;;  %9935 = vmatprep.subr.mxu0 %v11822_v1  ;;  %9940 = vmatprep.subr.mxu1 %v11822_v1  ;;  %v11824_v21 = vmax.f32 %v10824_v28, 0.0 }
 0x19a   : > { %v9859_v31 = vpop.f32.mrf.mxu0  ;;  %v9864_v32 = vpop.f32.mrf.mxu1  ;;  %9937 = vmatprep.mubr.msk.f32.mxu0 %vm10488_vm1, %v11822_v1  ;;  %9942 = vmatprep.mubr.msk.f32.mxu1 %vm10488_vm1, %v11822_v1 }
 0x19b   : > { %9936 = vmatpush3.msra.mxu0 %v2897_v29  ;;  %9941 = vmatpush3.msra.mxu1 %v11807_v30 }
 0x19c   : > { %v10842_v33 = vpop.f32.mrf.mxu0  ;;  %v10844_v34 = vpop.f32.mrf.mxu1  ;;  %9938 = vmatmul.mubr.msk.f32.vlgmr.msra.gmra.mxu0 %vm1726_vm3, %v10816_v24  ;;  %9943 = vmatmul.mubr.msk.f32.vlgmr.msra.gmra.mxu1 %vm1726_vm3, %v10816_v24 }
 0x19d   : > { %v11806_v35 = vmax.f32 %v10842_v33, 0.0  ;;  %v11805_v36 = vmax.f32 %v10844_v34, 0.0  ;;  %9945 = vmatprep.subr.mxu0 %v11822_v1  ;;  %9950 = vmatprep.subr.mxu1 %v11822_v1 }
 0x19e   : > { %v9869_v37 = vpop.f32.mrf.mxu0  ;;  %v9874_v38 = vpop.f32.mrf.mxu1  ;;  %9947 = vmatprep.mubr.msk.f32.mxu0 %vm10488_vm1, %v11822_v1  ;;  %9952 = vmatprep.mubr.msk.f32.mxu1 %vm10488_vm1, %v11822_v1 }
 0x19f   : > { %9946 = vmatpush3.msra.mxu0 %v11806_v35  ;;  %9951 = vmatpush3.msra.mxu1 %v11805_v36 }
 0x1a0   : > { %v10862_v39 = vpop.f32.mrf.mxu0  ;;  %v10864_v40 = vpop.f32.mrf.mxu1  ;;  %9948 = vmatmul.mubr.msk.f32.vlgmr.msra.gmra.mxu0 %vm1726_vm3, %v10816_v24  ;;  %9953 = vmatmul.mubr.msk.f32.vlgmr.msra.gmra.mxu1 %vm1726_vm3, %v10816_v24 }
 0x1a1   : > { %v11804_v41 = vmax.f32 %v10862_v39, 0.0  ;;  %v11803_v42 = vmax.f32 %v10864_v40, 0.0  ;;  %9955 = vmatprep.subr.mxu0 %v11822_v1  ;;  %9960 = vmatprep.subr.mxu1 %v11822_v1 }
 0x1a2   : > { %v9879_v43 = vpop.f32.mrf.mxu0  ;;  %v9884_v44 = vpop.f32.mrf.mxu1  ;;  %9957 = vmatprep.mubr.msk.f32.mxu0 %vm10488_vm1, %v11822_v1  ;;  %9962 = vmatprep.mubr.msk.f32.mxu1 %vm10488_vm1, %v11822_v1 }
 0x1a3   : > { %9956 = vmatpush3.msra.mxu0 %v11804_v41  ;;  %9961 = vmatpush3.msra.mxu1 %v11803_v42 }
 0x1a4   : > { %v10882_v45 = vpop.f32.mrf.mxu0  ;;  %v10884_v46 = vpop.f32.mrf.mxu1  ;;  %9958 = vmatmul.mubr.msk.f32.vlgmr.msra.gmra.mxu0 %vm1726_vm3, %v10816_v24  ;;  %9963 = vmatmul.mubr.msk.f32.vlgmr.msra.gmra.mxu1 %vm1726_vm3, %v10816_v24 }
 0x1a5   : > { %v11802_v47 = vmax.f32 %v10882_v45, 0.0  ;;  %v11801_v48 = vmax.f32 %v10884_v46, 0.0  ;;  %9965 = vmatprep.subr.mxu0 %v11822_v1  ;;  %9970 = vmatprep.subr.mxu1 %v11822_v1 }
 0x1a6   : > { %v9889_v49 = vpop.f32.mrf.mxu0  ;;  %v9894_v50 = vpop.f32.mrf.mxu1  ;;  %9967 = vmatprep.mubr.msk.f32.mxu0 %vm10488_vm1, %v11822_v1  ;;  %9972 = vmatprep.mubr.msk.f32.mxu1 %vm10488_vm1, %v11822_v1 }
 0x1a7   : > { %9966 = vmatpush3.msra.mxu0 %v11802_v47  ;;  %9971 = vmatpush3.msra.mxu1 %v11801_v48 }
 0x1a8   : > { %v10902_v51 = vpop.f32.mrf.mxu0  ;;  %v10904_v52 = vpop.f32.mrf.mxu1  ;;  %9968 = vmatmul.mubr.msk.f32.vlgmr.msra.gmra.mxu0 %vm1726_vm3, %v10816_v24  ;;  %9973 = vmatmul.mubr.msk.f32.vlgmr.msra.gmra.mxu1 %vm1726_vm3, %v10816_v24 }
 0x1a9   : > { %v11800_v53 = vmax.f32 %v10902_v51, 0.0  ;;  %v11799_v54 = vmax.f32 %v10904_v52, 0.0  ;;  %9975 = vmatprep.subr.mxu0 %v11822_v1  ;;  %9980 = vmatprep.subr.mxu1 %v11822_v1 }
 0x1aa   : > { %v9899_v55 = vpop.f32.mrf.mxu0  ;;  %v9904_v56 = vpop.f32.mrf.mxu1  ;;  %9977 = vmatprep.mubr.msk.f32.mxu0 %vm10488_vm1, %v11822_v1  ;;  %9982 = vmatprep.mubr.msk.f32.mxu1 %vm10488_vm1, %v11822_v1 }
 0x1ab   : > { %9976 = vmatpush3.msra.mxu0 %v11800_v53  ;;  %9981 = vmatpush3.msra.mxu1 %v11799_v54 }
 0x1ac   : > { %v10922_v57 = vpop.f32.mrf.mxu0  ;;  %v10924_v58 = vpop.f32.mrf.mxu1  ;;  %9978 = vmatmul.mubr.msk.f32.vlgmr.msra.gmra.mxu0 %vm1726_vm3, %v10816_v24  ;;  %9983 = vmatmul.mubr.msk.f32.vlgmr.msra.gmra.mxu1 %vm1726_vm3, %v10816_v24 }
 0x1ad   : > { %v11798_v59 = vmax.f32 %v10922_v57, 0.0  ;;  %v11797_v60 = vmax.f32 %v10924_v58, 0.0  ;;  %9985 = vmatprep.subr.mxu0 %v11822_v1  ;;  %9990 = vmatprep.subr.mxu1 %v11822_v1 }
 0x1ae   : > { %v9909_v61 = vpop.f32.mrf.mxu0  ;;  %v9914_v62 = vpop.f32.mrf.mxu1  ;;  %9987 = vmatprep.mubr.msk.f32.mxu0 %vm10488_vm1, %v11822_v1  ;;  %9992 = vmatprep.mubr.msk.f32.mxu1 %vm10488_vm1, %v11822_v1 }
 0x1af   : > { %9986 = vmatpush3.msra.mxu0 %v11798_v59  ;;  %9991 = vmatpush3.msra.mxu1 %v11797_v60 }
 0x1b0   : > { %v10942_v63 = vpop.f32.mrf.mxu0  ;;  %v10944_v0 = vpop.f32.mrf.mxu1  ;;  %9988 = vmatmul.mubr.msk.f32.vlgmr.msra.gmra.mxu0 %vm1726_vm3, %v10816_v24  ;;  %9993 = vmatmul.mubr.msk.f32.vlgmr.msra.gmra.mxu1 %vm1726_vm3, %v10816_v24 }
 0x1b1   : > { %v11796_v2 = vmax.f32 %v10942_v63, 0.0  ;;  %v11795_v3 = vmax.f32 %v10944_v0, 0.0  ;;  %9995 = vmatprep.subr.mxu0 %v11822_v1  ;;  %10000 = vmatprep.subr.mxu1 %v11822_v1 }
 0x1b2   : > { %v9919_v4 = vpop.f32.mrf.mxu0  ;;  %v9924_v5 = vpop.f32.mrf.mxu1  ;;  %9997 = vmatprep.mubr.msk.f32.mxu0 %vm10488_vm1, %v11822_v1  ;;  %10002 = vmatprep.mubr.msk.f32.mxu1 %vm10488_vm1, %v11822_v1 }
 0x1b3   : > { %9996 = vmatpush3.msra.mxu0 %v11796_v2  ;;  %10001 = vmatpush3.msra.mxu1 %v11795_v3 }
 0x1b4   : > { %9998 = vmatmul.mubr.msk.f32.vlgmr.msra.gmra.mxu0 %vm1726_vm3, %v10816_v24  ;;  %10003 = vmatmul.mubr.msk.f32.vlgmr.msra.gmra.mxu1 %vm1726_vm3, %v10816_v24 }
 0x1b5   : > { %10005 = vmatprep.subr.mxu0 %v11822_v1  ;;  %10010 = vmatprep.subr.mxu1 %v11822_v1 }
 0x1b6   : > { %10007 = vmatprep.mubr.msk.f32.mxu0 %vm10488_vm1, %v11822_v1  ;;  %10012 = vmatprep.mubr.msk.f32.mxu1 %vm10488_vm1, %v11822_v1 }
 0x1b7   : > { %10006 = vmatpush3.msra.mxu0 %v10975_v6  ;;  %10011 = vmatpush3.msra.mxu1 %v10975_v6 }
 0x1b8   : > { %10015 = vmatprep.subr.mxu0 %v11822_v1  ;;  %10020 = vmatprep.subr.mxu1 %v11822_v1 }
 0x258   : > { %v2980_v7 = vpop.f32.mrf.mxu0  ;;  %v3050_v8 = vpop.f32.mrf.mxu1 }
 0x259   : > { %v4034_v9 = vsel %vm1726_vm3, %v2980_v7, -inf  ;;  %v4041_v10 = vsel %vm1726_vm3, %v3050_v8, -inf }
 0x25a   : > { %v4035_v11 = vrot.slane %v4034_v9, 4  ;;  %v4042_v12 = vrot.slane %v4041_v10, 4  ;;  %v9929_v13 = vpop.f32.mrf.mxu0  ;;  %v9934_v14 = vpop.f32.mrf.mxu1 }
 0x25c   : > { %v4036_v15 = vmax.f32 %v4034_v9, %v4035_v11  ;;  %v4043_v16 = vmax.f32 %v4041_v10, %v4042_v12  ;;  %v10983_v17 = vpop.f32.mrf.mxu0  ;;  %v10985_v19 = vpop.f32.mrf.mxu1 }
 0x25d   : > { %v4048_v20 = vsel %vm1726_vm3, %v10983_v17, -inf  ;;  %v4055_v24 = vsel %vm1726_vm3, %v10985_v19, -inf }
 0x25e   : > { %v4037_v25 = vrot.slane %v4036_v15, 2  ;;  %v4044_v26 = vrot.slane %v4043_v16, 2  ;;  %v4049_v31 = vrot.slane %v4048_v20, 4  ;;  %v4056_v32 = vrot.slane %v4055_v24, 4  ;;  %v9939_v37 = vpop.f32.mrf.mxu0  ;;  %v9944_v38 = vpop.f32.mrf.mxu1 }
 0x260   : > { %v4038_v43 = vmax.f32 %v4036_v15, %v4037_v25  ;;  %v4045_v44 = vmax.f32 %v4043_v16, %v4044_v26  ;;  %v4050_v49 = vmax.f32 %v4048_v20, %v4049_v31  ;;  %v4057_v50 = vmax.f32 %v4055_v24, %v4056_v32  ;;  %v10991_v55 = vpop.f32.mrf.mxu0  ;;  %v10993_v56 = vpop.f32.mrf.mxu1 }
 0x261   : > { %v4062_v61 = vsel %vm1726_vm3, %v10991_v55, -inf  ;;  %v4069_v62 = vsel %vm1726_vm3, %v10993_v56, -inf }
 0x262   : > { %v4039_v4 = vrot.slane %v4038_v43, 1  ;;  %v4046_v5 = vrot.slane %v4045_v44, 1  ;;  %v4051_v9 = vrot.slane %v4050_v49, 2  ;;  %v4058_v10 = vrot.slane %v4057_v50, 2  ;;  %v9949_v11 = vpop.f32.mrf.mxu0  ;;  %v9954_v12 = vpop.f32.mrf.mxu1 }
 0x263   : > { %v4063_v13 = vrot.slane %v4062_v61, 4  ;;  %v4070_v14 = vrot.slane %v4069_v62, 4 }
 0x264   : > { %v4040_v15 = vmax.f32 %v4038_v43, %v4039_v4  ;;  %v4047_v16 = vmax.f32 %v4045_v44, %v4046_v5  ;;  %v4052_v20 = vmax.f32 %v4050_v49, %v4051_v9  ;;  %v4059_v24 = vmax.f32 %v4057_v50, %v4058_v10  ;;  %v10999_v25 = vpop.f32.mrf.mxu0  ;;  %v11001_v26 = vpop.f32.mrf.mxu1 }
 0x265   : > { %v4064_v31 = vmax.f32 %v4062_v61, %v4063_v13  ;;  %v4071_v32 = vmax.f32 %v4069_v62, %v4070_v14  ;;  %v4076_v37 = vsel %vm1726_vm3, %v10999_v25, -inf  ;;  %v4083_v38 = vsel %vm1726_vm3, %v11001_v26, -inf }
 0x266   : > { %v4146_v11 = vsub.f32 %v2980_v7, %v4040_v15  ;;  %v4147_v12 = vsub.f32 %v3050_v8, %v4047_v16  ;;  %v4053_v3 = vrot.slane %v4052_v20, 1  ;;  %v4060_v2 = vrot.slane %v4059_v24, 1  ;;  %v9959_v43 = vpop.f32.mrf.mxu0  ;;  %v9964_v44 = vpop.f32.mrf.mxu1 }
 0x267   : > { %v4065_v49 = vrot.slane %v4064_v31, 2  ;;  %v4072_v50 = vrot.slane %v4071_v32, 2  ;;  %v4077_v4 = vrot.slane %v4076_v37, 4  ;;  %v4084_v5 = vrot.slane %v4083_v38, 4 }
 0x268   : > { %v4162_v9 = vmul.f32 1.442695, %v4146_v11  ;;  %v4164_v10 = vmul.f32 1.442695, %v4147_v12  ;;  %v4054_v61 = vmax.f32 %v4052_v20, %v4053_v3  ;;  %v4061_v62 = vmax.f32 %v4059_v24, %v4060_v2  ;;  %v11007_v13 = vpop.f32.mrf.mxu0  ;;  %v11009_v14 = vpop.f32.mrf.mxu1 }
 0x269   : > { %v4066_v60 = vmax.f32 %v4064_v31, %v4065_v49  ;;  %v4073_v59 = vmax.f32 %v4071_v32, %v4072_v50  ;;  %v4078_v7 = vmax.f32 %v4076_v37, %v4077_v4  ;;  %v4085_v8 = vmax.f32 %v4083_v38, %v4084_v5 }
 0x26a   : > { %10335 = vpow2.f32 %v4162_v9  ;;  %v4148_v15 = vsub.f32 %v10983_v17, %v4054_v61  ;;  %v4149_v16 = vsub.f32 %v10985_v19, %v4061_v62  ;;  %v4090_v43 = vsel %vm1726_vm3, %v11007_v13, -inf  ;;  %v9969_v11 = vpop.f32.mrf.mxu0  ;;  %v9974_v12 = vpop.f32.mrf.mxu1 }
 0x26b   : > { %10337 = vpow2.f32 %v4164_v10  ;;  %v4067_v2 = vrot.slane %v4066_v60, 1  ;;  %v4074_v3 = vrot.slane %v4073_v59, 1  ;;  %v4079_v20 = vrot.slane %v4078_v7, 2 }
 0x26c   : > { %v4166_v24 = vmul.f32 1.442695, %v4148_v15  ;;  %v4168_v44 = vmul.f32 1.442695, %v4149_v16  ;;  %v4086_v31 = vrot.slane %v4085_v8, 2  ;;  %v4091_v32 = vrot.slane %v4090_v43, 4  ;;  %v11015_v37 = vpop.f32.mrf.mxu0  ;;  %v11017_v38 = vpop.f32.mrf.mxu1 }
 0x26d   : > { %v4068_v17 = vmax.f32 %v4066_v60, %v4067_v2  ;;  %v4075_v49 = vmax.f32 %v4073_v59, %v4074_v3  ;;  %v4080_v19 = vmax.f32 %v4078_v7, %v4079_v20  ;;  %v4097_v50 = vsel %vm1726_vm3, %v11009_v14, -inf }
 0x26e   : > { %10339 = vpow2.f32 %v4166_v24  ;;  %v4087_v4 = vmax.f32 %v4085_v8, %v4086_v31  ;;  %v4092_v5 = vmax.f32 %v4090_v43, %v4091_v32  ;;  %v4098_v9 = vrot.slane %v4097_v50, 4  ;;  %v9979_v10 = vpop.f32.mrf.mxu0  ;;  %v9984_v61 = vpop.f32.mrf.mxu1 }
 0x26f   : > { %10341 = vpow2.f32 %v4168_v44  ;;  %v4150_v62 = vsub.f32 %v10991_v55, %v4068_v17  ;;  %v4151_v15 = vsub.f32 %v10993_v56, %v4075_v49  ;;  %v4081_v16 = vrot.slane %v4080_v19, 1 }
 0x270   : > { %v4088_v11 = vrot.slane %v4087_v4, 1  ;;  %v4093_v12 = vrot.slane %v4092_v5, 2  ;;  %v4099_v60 = vmax.f32 %v4097_v50, %v4098_v9  ;;  %v4104_v59 = vsel %vm1726_vm3, %v11015_v37, -inf  ;;  %v11025_v7 = vpop.f32.mrf.mxu0  ;;  %v11027_v2 = vpop.f32.mrf.mxu1 }
 0x271   : > { %v4170_v8 = vmul.f32 1.442695, %v4150_v62  ;;  %v4172_v43 = vmul.f32 1.442695, %v4151_v15  ;;  %v4082_v3 = vmax.f32 %v4080_v19, %v4081_v16  ;;  %v4105_v20 = vrot.slane %v4104_v59, 4 }
 0x272   : > { %v4089_v24 = vmax.f32 %v4087_v4, %v4088_v11  ;;  %v4094_v44 = vmax.f32 %v4092_v5, %v4093_v12  ;;  %v4100_v55 = vrot.slane %v4099_v60, 2  ;;  %v4111_v56 = vsel %vm1726_vm3, %v11017_v38, -inf  ;;  %v9989_v31 = vpop.f32.mrf.mxu0  ;;  %v9994_v32 = vpop.f32.mrf.mxu1 }
 0x273   : > { %10343 = vpow2.f32 %v4170_v8  ;;  %v4152_v17 = vsub.f32 %v10999_v25, %v4082_v3  ;;  %v4106_v49 = vmax.f32 %v4104_v59, %v4105_v20  ;;  %v4112_v50 = vrot.slane %v4111_v56, 4 }
 0x274   : > { %10345 = vpow2.f32 %v4172_v43  ;;  %v4153_v9 = vsub.f32 %v11001_v26, %v4089_v24  ;;  %v4095_v10 = vrot.slane %v4094_v44, 1  ;;  %v4101_v61 = vmax.f32 %v4099_v60, %v4100_v55  ;;  %v11033_v19 = vpop.f32.mrf.mxu0  ;;  %v11035_v4 = vpop.f32.mrf.mxu1 }
 0x275   : > { %v4174_v5 = vmul.f32 1.442695, %v4152_v17  ;;  %v4107_v62 = vrot.slane %v4106_v49, 2  ;;  %v4113_v15 = vmax.f32 %v4111_v56, %v4112_v50  ;;  %v4118_v16 = vsel %vm1726_vm3, %v11025_v7, -inf }
 0x276   : > { %v4176_v11 = vmul.f32 1.442695, %v4153_v9  ;;  %v4096_v12 = vmax.f32 %v4094_v44, %v4095_v10  ;;  %v4102_v25 = vrot.slane %v4101_v61, 1  ;;  %v4119_v59 = vrot.slane %v4118_v16, 4  ;;  %v9999_v8 = vpop.f32.mrf.mxu0  ;;  %v10004_v43 = vpop.f32.mrf.mxu1 }
 0x277   : > { %v11039_v3 = vpop.eup %10335  ;;  %10347 = vpow2.f32 %v4174_v5  ;;  %v4108_v26 = vmax.f32 %v4106_v49, %v4107_v62  ;;  %v4114_v60 = vrot.slane %v4113_v15, 2  ;;  %v4125_v20 = vsel %vm1726_vm3, %v11027_v2, -inf }
 0x278   : > { %v11043_v24 = vpop.eup %10337  ;;  %v4194_v55 = vsel %vm1726_vm3, %v11039_v3, 0.0  ;;  %10349 = vpow2.f32 %v4176_v11  ;;  %v4154_v44 = vsub.f32 %v11007_v13, %v4096_v12  ;;  %v4103_v56 = vmax.f32 %v4101_v61, %v4102_v25 }
 0x279   : > { %v4195_v31 = vrot.slane %v4194_v55, 4  ;;  %v4201_v32 = vsel %vm1726_vm3, %v11043_v24, 0.0  ;;  %v4109_v17 = vrot.slane %v4108_v26, 1  ;;  %v4115_v50 = vmax.f32 %v4113_v15, %v4114_v60 }
 0x27a   : > { %v4202_v49 = vrot.slane %v4201_v32, 4  ;;  %v4178_v9 = vmul.f32 1.442695, %v4154_v44  ;;  %v4155_v10 = vsub.f32 %v11009_v14, %v4103_v56  ;;  %v4120_v5 = vmax.f32 %v4118_v16, %v4119_v59 }
 0x27b   : > { %v11051_v62 = vpop.eup %10339  ;;  %v4196_v8 = vadd.f32 %v4195_v31, %v4194_v55  ;;  %v4110_v43 = vmax.f32 %v4108_v26, %v4109_v17  ;;  %v4116_v54 = vrot.slane %v4115_v50, 1  ;;  %v4126_v11 = vrot.slane %v4125_v20, 4 }
 0x27c   : > { %v11053_v53 = vpop.eup %10341  ;;  %v4203_v13 = vadd.f32 %v4202_v49, %v4201_v32  ;;  %v4208_v61 = vsel %vm1726_vm3, %v11051_v62, 0.0  ;;  %10351 = vpow2.f32 %v4178_v9  ;;  %v4180_v12 = vmul.f32 1.442695, %v4155_v10 }
 0x27d   : > { %v4197_v15 = vrot.slane %v4196_v8, 2  ;;  %v4209_v25 = vrot.slane %v4208_v61, 4  ;;  %v4215_v14 = vsel %vm1726_vm3, %v11053_v53, 0.0  ;;  %v4156_v16 = vsub.f32 %v11015_v37, %v4110_v43 }
 0x27e   : > { %v4204_v59 = vrot.slane %v4203_v13, 2  ;;  %v4216_v60 = vrot.slane %v4215_v14, 4  ;;  %10353 = vpow2.f32 %v4180_v12  ;;  %v4117_v26 = vmax.f32 %v4115_v50, %v4116_v54 }
 0x27f   : > { %v4198_v55 = vadd.f32 %v4197_v15, %v4196_v8  ;;  %v4210_v44 = vadd.f32 %v4209_v25, %v4208_v61  ;;  %v4182_v56 = vmul.f32 1.442695, %v4156_v16  ;;  %v4121_v31 = vrot.slane %v4120_v5, 2 }
 0x280   : > { %v11060_v32 = vpop.eup %10343  ;;  %v4205_v17 = vadd.f32 %v4204_v59, %v4203_v13  ;;  %v4217_v49 = vadd.f32 %v4216_v60, %v4215_v14  ;;  %v4157_v9 = vsub.f32 %v11017_v38, %v4117_v26  ;;  %v4127_v10 = vmax.f32 %v4125_v20, %v4126_v11 }
 0x281   : > { %v11063_v48 = vpop.eup %10345  ;;  %v4199_v47 = vrot.slane %v4198_v55, 1  ;;  %v4211_v42 = vrot.slane %v4210_v44, 2  ;;  %v4222_v37 = vsel %vm1726_vm3, %v11060_v32, 0.0  ;;  %10355 = vpow2.f32 %v4182_v56 }
 0x282   : > { %v4206_v54 = vrot.slane %v4205_v17, 1  ;;  %v4218_v50 = vrot.slane %v4217_v49, 2  ;;  %v4223_v8 = vrot.slane %v4222_v37, 4  ;;  %v4229_v43 = vsel %vm1726_vm3, %v11063_v48, 0.0 }
 0x283   : > { %v4200_v61 = vadd.f32 %v4199_v47, %v4198_v55  ;;  %v4212_v13 = vadd.f32 %v4211_v42, %v4210_v44  ;;  %v4230_v12 = vrot.slane %v4229_v43, 4  ;;  %v4184_v15 = vmul.f32 1.442695, %v4157_v9 }
 0x284   : > { %v11069_v38 = vpop.eup %10347  ;;  %v4207_v20 = vadd.f32 %v4206_v54, %v4205_v17  ;;  %v4219_v11 = vadd.f32 %v4218_v50, %v4217_v49  ;;  %v4224_v25 = vadd.f32 %v4223_v8, %v4222_v37  ;;  %v4122_v14 = vmax.f32 %v4120_v5, %v4121_v31 }
 0x285   : > { %v11071_v16 = vpop.eup %10349  ;;  %10357 = vrcp.f32 %v4200_v61  ;;  %v4213_v59 = vrot.slane %v4212_v13, 1  ;;  %v4231_v60 = vadd.f32 %v4230_v12, %v4229_v43  ;;  %v4236_v26 = vsel %vm1726_vm3, %v11069_v38, 0.0 }
 0x286   : > { %10359 = vrcp.f32 %v4207_v20  ;;  %v4220_v56 = vrot.slane %v4219_v11, 1  ;;  %v4225_v47 = vrot.slane %v4224_v25, 2  ;;  %v4237_v42 = vrot.slane %v4236_v26, 4 }
 0x287   : > { %v4214_v55 = vadd.f32 %v4213_v59, %v4212_v13  ;;  %v4232_v44 = vrot.slane %v4231_v60, 2  ;;  %v4243_v17 = vsel %vm1726_vm3, %v11071_v16, 0.0  ;;  %10361 = vpow2.f32 %v4184_v15 }
 0x288   : > { %v4221_v49 = vadd.f32 %v4220_v56, %v4219_v11  ;;  %v4226_v5 = vadd.f32 %v4225_v47, %v4224_v25  ;;  %v4238_v31 = vadd.f32 %v4237_v42, %v4236_v26  ;;  %v4244_v9 = vrot.slane %v4243_v17, 4 }
 0x289   : > { %v11077_v37 = vpop.eup %10351  ;;  %10363 = vrcp.f32 %v4214_v55  ;;  %v4233_v54 = vadd.f32 %v4232_v44, %v4231_v60  ;;  %v4123_v50 = vrot.slane %v4122_v14, 1  ;;  %v4128_v8 = vrot.slane %v4127_v10, 2 }
 0x28a   : > { %10365 = vrcp.f32 %v4221_v49  ;;  %v4227_v43 = vrot.slane %v4226_v5, 1  ;;  %v4239_v61 = vrot.slane %v4238_v31, 2  ;;  %v4245_v12 = vadd.f32 %v4244_v9, %v4243_v17 }
 0x28b   : > { %v11079_v13 = vpop.eup %10353  ;;  %v4234_v20 = vrot.slane %v4233_v54, 1  ;;  %v4250_v15 = vsel %vm1726_vm3, %v11077_v37, 0.0  ;;  %v4124_v11 = vmax.f32 %v4122_v14, %v4123_v50  ;;  %v4129_v25 = vmax.f32 %v4127_v10, %v4128_v8 }
 0x28c   : > { %v4228_v59 = vadd.f32 %v4227_v43, %v4226_v5  ;;  %v4240_v26 = vadd.f32 %v4239_v61, %v4238_v31  ;;  %v4246_v56 = vrot.slane %v4245_v12, 2  ;;  %v4251_v47 = vrot.slane %v4250_v15, 4 }
 0x28d   : > { %v4235_v42 = vadd.f32 %v4234_v20, %v4233_v54  ;;  %v4257_v60 = vsel %vm1726_vm3, %v11079_v13, 0.0  ;;  %v4158_v55 = vsub.f32 %v11025_v7, %v4124_v11  ;;  %v4130_v44 = vrot.slane %v4129_v25, 1 }
 0x28e   : > { %v11086_v17 = vpop.eup %10355  ;;  %10367 = vrcp.f32 %v4228_v59  ;;  %v4241_v49 = vrot.slane %v4240_v26, 1  ;;  %v4247_v9 = vadd.f32 %v4246_v56, %v4245_v12  ;;  %v4252_v41 = vadd.f32 %v4251_v47, %v4250_v15 }
 0x28f   : > { %10369 = vrcp.f32 %v4235_v42  ;;  %v4258_v14 = vrot.slane %v4257_v60, 4  ;;  %v4264_v10 = vsel %vm1726_vm3, %v11086_v17, 0.0  ;;  %v4186_v5 = vmul.f32 1.442695, %v4158_v55 }
 0x290   : > { %v4242_v31 = vadd.f32 %v4241_v49, %v4240_v26  ;;  %v4248_v54 = vrot.slane %v4247_v9, 1  ;;  %v4253_v50 = vrot.slane %v4252_v41, 2  ;;  %v4265_v8 = vrot.slane %v4264_v10, 4 }
 0x291   : > { %v4259_v43 = vadd.f32 %v4258_v14, %v4257_v60  ;;  %10371 = vpow2.f32 %v4186_v5  ;;  %v4131_v7 = vmax.f32 %v4129_v25, %v4130_v44  ;;  %v4132_v61 = vsel %vm1726_vm3, %v11033_v19, -inf }
 0x292   : > { %v10358_v20 = vpop.eup %10357  ;;  %10373 = vrcp.f32 %v4242_v31  ;;  %v4249_v12 = vadd.f32 %v4248_v54, %v4247_v9  ;;  %v4254_v15 = vadd.f32 %v4253_v50, %v4252_v41  ;;  %v4266_v11 = vadd.f32 %v4265_v8, %v4264_v10 }
 0x293   : > { %v10360_v59 = vpop.eup %10359  ;;  %v4260_v56 = vrot.slane %v4259_v43, 2  ;;  %v4159_v47 = vsub.f32 %v11027_v2, %v4131_v7  ;;  %v4133_v42 = vrot.slane %v4132_v61, 4  ;;  %v4139_v26 = vsel %vm1726_vm3, %v11035_v4, -inf }
 0x294   : > { %v11095_v55 = vpop.eup %10361  ;;  %10375 = vrcp.f32 %v4249_v12  ;;  %v4255_v25 = vrot.slane %v4254_v15, 1  ;;  %v4267_v60 = vrot.slane %v4266_v11, 2  ;;  %v4140_v44 = vrot.slane %v4139_v26, 4 }
 0x295   : > { %v4261_v49 = vadd.f32 %v4260_v56, %v4259_v43  ;;  %v4271_v9 = vsel %vm1726_vm3, %v11095_v55, 0.0  ;;  %v4188_v41 = vmul.f32 1.442695, %v4159_v47  ;;  %v4134_v14 = vmax.f32 %v4132_v61, %v4133_v42 }
 0x296   : > { %v10364_v10 = vpop.eup %10363  ;;  %v4256_v5 = vadd.f32 %v4255_v25, %v4254_v15  ;;  %v4268_v31 = vadd.f32 %v4267_v60, %v4266_v11  ;;  %v4272_v2 = vrot.slane %v4271_v9, 4  ;;  %v4141_v54 = vmax.f32 %v4139_v26, %v4140_v44 }
 0x297   : > { %v10366_v50 = vpop.eup %10365  ;;  %v4262_v8 = vrot.slane %v4261_v49, 1  ;;  %10377 = vpow2.f32 %v4188_v41  ;;  %v4135_v7 = vrot.slane %v4134_v14, 2  ;;  %v4322_v12 = vmul.f32 %v10358_v20, %v11039_v3 }
 0x298   : > { %10379 = vrcp.f32 %v4256_v5  ;;  %v4269_v36 = vrot.slane %v4268_v31, 1  ;;  %v4273_v35 = vadd.f32 %v4272_v2, %v4271_v9  ;;  %v4142_v43 = vrot.slane %v4141_v54, 2 }
 0x299   : > { %v4263_v56 = vadd.f32 %v4262_v8, %v4261_v49  ;;  %v4136_v30 = vmax.f32 %v4134_v14, %v4135_v7  ;;  %v4338_v61 = vmul.f32 %v4322_v12, %v2895_v22  ;;  %v4323_v15 = vmul.f32 %v10360_v59, %v11043_v24 }
 0x29a   : > { %v4270_v11 = vadd.f32 %v4269_v36, %v4268_v31  ;;  %v4274_v47 = vrot.slane %v4273_v35, 2  ;;  %v4143_v42 = vmax.f32 %v4141_v54, %v4142_v43  ;;  %v4324_v26 = vmul.f32 %v10364_v10, %v11051_v62 }
 0x29b   : > { %v10368_v25 = vpop.eup %10367  ;;  %10381 = vrcp.f32 %v4263_v56  ;;  %v4137_v60 = vrot.slane %v4136_v30, 1  ;;  %10008 = vmatmul.mubr.msk.f32.vlgmr.msra.gmra.mxu0 %vm1726_vm3, %v4338_v61  ;;  %v4339_v3 = vmul.f32 %v4323_v15, %v2896_v23  ;;  %v4325_v20 = vmul.f32 %v10366_v50, %v11053_v53 }
 0x29c   : > { %v10370_v44 = vpop.eup %10369  ;;  %10383 = vrcp.f32 %v4270_v11  ;;  %v4275_v18 = vadd.f32 %v4274_v47, %v4273_v35  ;;  %v4144_v22 = vrot.slane %v4143_v42, 1  ;;  %10016 = vmatpush3.msra.mxu0 %v10975_v6  ;;  %10017 = vmatprep.mubr.msk.f32.mxu0 %vm10488_vm1, %v11822_v1  ;;  %v4340_v36 = vmul.f32 %v4324_v26, %v2897_v29 }
 0x29d   : > { %v4138_v24 = vmax.f32 %v4136_v30, %v4137_v60  ;;  %10013 = vmatmul.mubr.msk.f32.vlgmr.msra.gmra.mxu1 %vm1726_vm3, %v4339_v3  ;;  %v4341_v23 = vmul.f32 %v4325_v20, %v11824_v21  ;;  %10025 = vmatprep.subr.mxu0 %v11822_v1  ;;  %v4326_v53 = vmul.f32 %v10368_v25, %v11060_v32  ;;  %v11825_v32 = vmax.f32 %v10842_v33, 0.0 }
 0x29e   : > { %v11118_v35 = vpop.eup %10371  ;;  %v4276_v62 = vrot.slane %v4275_v18, 1  ;;  %v4145_v59 = vmax.f32 %v4143_v42, %v4144_v22  ;;  %10021 = vmatpush3.msra.mxu1 %v10975_v6  ;;  %10022 = vmatprep.mubr.msk.f32.mxu1 %vm10488_vm1, %v11822_v1  ;;  %v4327_v27 = vmul.f32 %v10370_v44, %v11063_v48  ;;  %v11828_v7 = vmax.f32 %v10864_v40, 0.0 }
 0x29f   : > { %v10374_v29 = vpop.eup %10373  ;;  %v4278_v28 = vsel %vm1726_vm3, %v11118_v35, 0.0  ;;  %v4160_v30 = vsub.f32 %v11033_v19, %v4138_v24  ;;  %10018 = vmatmul.mubr.msk.f32.vlgmr.msra.gmra.mxu0 %vm1726_vm3, %v4340_v36  ;;  %10030 = vmatprep.subr.mxu1 %v11822_v1  ;;  %v4342_v49 = vmul.f32 %v4326_v53, %v11825_v32  ;;  %v11826_v19 = vmax.f32 %v10844_v34, 0.0 }
 0x2a0   : > { %v4277_v9 = vadd.f32 %v4276_v62, %v4275_v18  ;;  %v4279_v41 = vrot.slane %v4278_v28, 4  ;;  %v4161_v14 = vsub.f32 %v11035_v4, %v4145_v59  ;;  %10026 = vmatpush3.msra.mxu0 %v10975_v6  ;;  %10027 = vmatprep.mubr.msk.f32.mxu0 %vm10488_vm1, %v11822_v1  ;;  %v4328_v33 = vmul.f32 %v10374_v29, %v11069_v38 }
 0x2a1   : > { %v10376_v48 = vpop.eup %10375  ;;  %v4190_v10 = vmul.f32 1.442695, %v4160_v30  ;;  %10023 = vmatmul.mubr.msk.f32.vlgmr.msra.gmra.mxu1 %vm1726_vm3, %v4341_v23  ;;  %v4343_v5 = vmul.f32 %v4327_v27, %v11826_v19  ;;  %10035 = vmatprep.subr.mxu0 %v11822_v1  ;;  %v11827_v34 = vmax.f32 %v10862_v39, 0.0  ;;  %v11829_v40 = vmax.f32 %v10882_v45, 0.0 }
 0x2a2   : > { %10385 = vrcp.f32 %v4277_v9  ;;  %v4280_v31 = vadd.f32 %v4279_v41, %v4278_v28  ;;  %v4192_v2 = vmul.f32 1.442695, %v4161_v14  ;;  %10031 = vmatpush3.msra.mxu1 %v10975_v6  ;;  %10032 = vmatprep.mubr.msk.f32.mxu1 %vm10488_vm1, %v11822_v1  ;;  %v4329_v4 = vmul.f32 %v10376_v48, %v11071_v16 }
 0x2a3   : > { %10387 = vpow2.f32 %v4190_v10  ;;  %10028 = vmatmul.mubr.msk.f32.vlgmr.msra.gmra.mxu0 %vm1726_vm3, %v4342_v49  ;;  %10040 = vmatprep.subr.mxu1 %v11822_v1  ;;  %v4344_v54 = vmul.f32 %v4328_v33, %v11827_v34  ;;  %v11830_v45 = vmax.f32 %v10884_v46, 0.0  ;;  %v11831_v20 = vmax.f32 %v10902_v51, 0.0 }
 0x2a4   : > { %v11148_v50 = vpop.eup %10377  ;;  %v4281_v38 = vrot.slane %v4280_v31, 2  ;;  %10389 = vpow2.f32 %v4192_v2  ;;  %10036 = vmatpush3.msra.mxu0 %v10975_v6  ;;  %10037 = vmatprep.mubr.msk.f32.mxu0 %vm10488_vm1, %v11822_v1  ;;  %v4345_v12 = vmul.f32 %v4329_v4, %v11828_v7  ;;  %v11832_v53 = vmax.f32 %v10904_v52, 0.0 }
 0x2a5   : > { %v10380_v8 = vpop.eup %10379  ;;  %v4285_v16 = vsel %vm1726_vm3, %v11148_v50, 0.0  ;;  %10033 = vmatmul.mubr.msk.f32.vlgmr.msra.gmra.mxu1 %vm1726_vm3, %v4343_v5  ;;  %10045 = vmatprep.subr.mxu0 %v11822_v1  ;;  %v11833_v48 = vmax.f32 %v10922_v57, 0.0 }
 0x2a6   : > { %v4282_v39 = vadd.f32 %v4281_v38, %v4280_v31  ;;  %v4286_v43 = vrot.slane %v4285_v16, 4  ;;  %10041 = vmatpush3.msra.mxu1 %v10975_v6  ;;  %10042 = vmatprep.mubr.msk.f32.mxu1 %vm10488_vm1, %v11822_v1  ;;  %v4330_v56 = vmul.f32 %v10380_v8, %v11077_v37 }
 0x2a7   : > { %10038 = vmatmul.mubr.msk.f32.vlgmr.msra.gmra.mxu0 %vm1726_vm3, %v4344_v54  ;;  %10050 = vmatprep.subr.mxu1 %v11822_v1  ;;  %v11835_v54 = vmax.f32 %v10942_v63, 0.0 }
 0x2a8   : > { %v10382_v61 = vpop.eup %10381  ;;  %v4283_v15 = vrot.slane %v4282_v39, 1  ;;  %v4287_v11 = vadd.f32 %v4286_v43, %v4285_v16  ;;  %10046 = vmatpush3.msra.mxu0 %v10975_v6  ;;  %10047 = vmatprep.mubr.msk.f32.mxu0 %vm10488_vm1, %v11822_v1  ;;  %v4346_v47 = vmul.f32 %v4330_v56, %v11829_v40  ;;  %v10463_v43 = vld [vmem:[%s10703_s24] sm:$0xff] }
 0x2a9   : > { %v10384_v42 = vpop.eup %10383  ;;  %10043 = vmatmul.mubr.msk.f32.vlgmr.msra.gmra.mxu1 %vm1726_vm3, %v4345_v12  ;;  %v4331_v37 = vmul.f32 %v10382_v61, %v11079_v13  ;;  %10055 = vmatprep.subr.mxu0 %v11822_v1 }
 0x2aa   : > { %v4284_v26 = vadd.f32 %v4283_v15, %v4282_v39  ;;  %v4288_v25 = vrot.slane %v4287_v11, 2  ;;  %10051 = vmatpush3.msra.mxu1 %v10975_v6  ;;  %10052 = vmatprep.mubr.msk.f32.mxu1 %vm10488_vm1, %v11822_v1  ;;  %v4332_v60 = vmul.f32 %v10384_v42, %v11086_v17  ;;  %v10464_v15 = vld [vmem:[%s10703_s24 + $0x8] sm:$0xff] }
 0x2ab   : > { %10048 = vmatmul.mubr.msk.f32.vlgmr.msra.gmra.mxu0 %vm1726_vm3, %v4346_v47  ;;  %v4347_v3 = vmul.f32 %v4331_v37, %v11830_v45  ;;  %10060 = vmatprep.subr.mxu1 %v11822_v1  ;;  %v10465_v37 = vld [vmem:[%s10703_s24 + $0x10] sm:$0xff] }
 0x2ac   : > { %10391 = vrcp.f32 %v4284_v26  ;;  %v4289_v13 = vadd.f32 %v4288_v25, %v4287_v11  ;;  %10056 = vmatpush3.msra.mxu0 %v10975_v6  ;;  %10057 = vmatprep.mubr.msk.f32.mxu0 %vm10488_vm1, %v11822_v1  ;;  %v4348_v44 = vmul.f32 %v4332_v60, %v11831_v20  ;;  %v10466_v60 = vld [vmem:[%s10703_s24 + $0x18] sm:$0xff] }
 0x2ad   : > { %10053 = vmatmul.mubr.msk.f32.vlgmr.msra.gmra.mxu1 %vm1726_vm3, %v4347_v3  ;;  %10065 = vmatprep.subr.mxu0 %v11822_v1 }
 0x2ae   : > { %v4290_v17 = vrot.slane %v4289_v13, 1  ;;  %10061 = vmatpush3.msra.mxu1 %v10975_v6  ;;  %10062 = vmatprep.mubr.msk.f32.mxu1 %vm10488_vm1, %v11822_v1 }
 0x2af   : > { %v10386_v46 = vpop.eup %10385  ;;  %10058 = vmatmul.mubr.msk.f32.vlgmr.msra.gmra.mxu0 %vm1726_vm3, %v4348_v44  ;;  %10070 = vmatprep.subr.mxu1 %v11822_v1  ;;  %v10467_v44 = vld [vmem:[%s10703_s24 + $0x20] sm:$0xff] }
 0x2b0   : > { %v10388_v18 = vpop.eup %10387  ;;  %v4291_v22 = vadd.f32 %v4290_v17, %v4289_v13  ;;  %v4333_v51 = vmul.f32 %v10386_v46, %v11095_v55  ;;  %10066 = vmatpush3.msra.mxu0 %v10975_v6  ;;  %10067 = vmatprep.mubr.msk.f32.mxu0 %vm10488_vm1, %v11822_v1 }
 0x2b1   : > { %v10390_v36 = vpop.eup %10389  ;;  %v4292_v24 = vsel %vm1726_vm3, %v10388_v18, 0.0  ;;  %10075 = vmatprep.subr.mxu0 %v11822_v1 }
 0x2b2   : > { %10393 = vrcp.f32 %v4291_v22  ;;  %v4293_v21 = vrot.slane %v4292_v24, 4  ;;  %v4299_v23 = vsel %vm1726_vm3, %v10390_v36, 0.0  ;;  %v4349_v62 = vmul.f32 %v4333_v51, %v11832_v53 }
 0x2b3   : > { %v4300_v59 = vrot.slane %v4299_v23, 4 }
 0x2b4   : > { %v4294_v27 = vadd.f32 %v4293_v21, %v4292_v24  ;;  %10063 = vmatmul.mubr.msk.f32.vlgmr.msra.gmra.mxu1 %vm1726_vm3, %v4349_v62  ;;  %v10469_v21 = vld [vmem:[%s10703_s24 + $0x30] sm:$0xff]  ;;  %v10470_v62 = vld [vmem:[%s10703_s24 + $0x38] sm:$0xff] }
 0x2b5   : > { %v4301_v55 = vadd.f32 %v4300_v59, %v4299_v23  ;;  %10071 = vmatpush3.msra.mxu1 %v10975_v6  ;;  %10072 = vmatprep.mubr.msk.f32.mxu1 %vm10488_vm1, %v11822_v1 }
 0x2b6   : > { %v4295_v29 = vrot.slane %v4294_v27, 2  ;;  %10080 = vmatprep.subr.mxu1 %v11822_v1 }
 0x2b7   : > { %v4302_v28 = vrot.slane %v4301_v55, 2 }
 0x2b8   : > { %v4296_v30 = vadd.f32 %v4295_v29, %v4294_v27 }
 0x2b9   : > { %v10392_v32 = vpop.eup %10391  ;;  %v4303_v49 = vadd.f32 %v4302_v28, %v4301_v55  ;;  %v10471_v28 = vld [vmem:[%s10749_s28] sm:$0xff] }
 0x2ba   : > { %v4297_v9 = vrot.slane %v4296_v30, 1  ;;  %v4334_v52 = vmul.f32 %v10392_v32, %v11118_v35  ;;  %v11834_v35 = vmax.f32 %v10924_v58, 0.0  ;;  %v11836_v58 = vmax.f32 %v10944_v0, 0.0  ;;  %v10472_v32 = vld [vmem:[%s10749_s28 + $0x8] sm:$0xff] }
 0x2bb   : > { %v4304_v41 = vrot.slane %v4303_v49, 1 }
 0x2bc   : > { %v4298_v14 = vadd.f32 %v4297_v9, %v4296_v30  ;;  %v4350_v10 = vmul.f32 %v4334_v52, %v11833_v48  ;;  %v10473_v9 = vld [vmem:[%s10749_s28 + $0x10] sm:$0xff]  ;;  %v10474_v48 = vld [vmem:[%s10749_s28 + $0x18] sm:$0xff] }
 0x2bd   : > { %v4305_v19 = vadd.f32 %v4304_v41, %v4303_v49 }
 0x2be   : > { %10395 = vrcp.f32 %v4298_v14  ;;  %10068 = vmatmul.mubr.msk.f32.vlgmr.msra.gmra.mxu0 %vm1726_vm3, %v4350_v10 }
 0x2bf   : > { %v10394_v5 = vpop.eup %10393  ;;  %10397 = vrcp.f32 %v4305_v19  ;;  %10076 = vmatpush3.msra.mxu0 %v10975_v6  ;;  %10077 = vmatprep.mubr.msk.f32.mxu0 %vm10488_vm1, %v11822_v1 }
 0x2c0   : > { %v4335_v33 = vmul.f32 %v10394_v5, %v11148_v50  ;;  %10085 = vmatprep.subr.mxu0 %v11822_v1 }
 0x2c2   : > { %v4351_v31 = vmul.f32 %v4335_v33, %v11834_v35  ;;  %v10475_v33 = vld [vmem:[%s10749_s28 + $0x20] sm:$0xff] }
 0x2c4   : > { %10073 = vmatmul.mubr.msk.f32.vlgmr.msra.gmra.mxu1 %vm1726_vm3, %v4351_v31 }
 0x2c5   : > { %10081 = vmatpush3.msra.mxu1 %v10975_v6  ;;  %10082 = vmatprep.mubr.msk.f32.mxu1 %vm10488_vm1, %v11822_v1  ;;  %v11236_v6 = vld [vmem:[%s11788_s7] ss:$0 sm:$0xff] }
 0x2c6   : > { %10090 = vmatprep.subr.mxu1 %v11822_v1 }
 0x2cb   : > { %v10396_v57 = vpop.eup %10395 }
 0x2cc   : > { %v10398_v2 = vpop.eup %10397  ;;  %v4336_v4 = vmul.f32 %v10396_v57, %v10388_v18  ;;  %v10468_v18 = vld [vmem:[%s10703_s24 + $0x28] sm:$0xff] }
 0x2cd   : > { %v4337_v34 = vmul.f32 %v10398_v2, %v10390_v36  ;;  %v10476_v2 = vld [vmem:[%s10749_s28 + $0x28] sm:$0xff] }
 0x2ce   : > { %v4352_v50 = vmul.f32 %v4336_v4, %v11835_v54 }
 0x2cf   : > { %v4353_v38 = vmul.f32 %v4337_v34, %v11836_v58 }
 0x2d0   : > { %10078 = vmatmul.mubr.msk.f32.vlgmr.msra.gmra.mxu0 %vm1726_vm3, %v4352_v50 }
 0x2d1   : > { %10083 = vmatmul.mubr.msk.f32.vlgmr.msra.gmra.mxu1 %vm1726_vm3, %v4353_v38  ;;  %10087 = vmatprep.mubr.msk.f32.mxu0 %vm10488_vm1, %v11822_v1 }
 0x2d2   : > { %10092 = vmatprep.mubr.msk.f32.mxu1 %vm10488_vm1, %v11822_v1 }
 0x35b   : > { %v4430_v63 = vpop.f32.mrf.mxu0 }
 0x35c   : > { %v4431_v0 = vadd.f32 %v11236_v6, %v4430_v63  ;;  %v10477_v63 = vld [vmem:[%s10749_s28 + $0x30] sm:$0xff] }
 0x35d   : > { %v4503_v8 = vpop.f32.mrf.mxu1  ;;  %v10009_v16 = vpop.f32.mrf.mxu0 }
 0x35e   : > { %v4504_v7 = vadd.f32 %v11236_v6, %v4503_v8  ;;  %10086 = vmatpush3.msra.mxu0 %v4431_v0  ;;  %v10478_v0 = vld [vmem:[%s10749_s28 + $0x38] sm:$0xff]  ;;  %v11340_v16 = vld [vmem:[%s11790_s9] sm:$0xff] }
 0x35f   : > { %v10014_v12 = vpop.f32.mrf.mxu1  ;;  %v4576_v39 = vpop.f32.mrf.mxu0  ;;  %10088 = vmatmul.mubr.msk.f32.vlgmr.msra.gmra.mxu0 %vm1726_vm3, %v10463_v43  ;;  %10095 = vmatprep.subr.mxu0 %v11822_v1 }
 0x360   : > { %10091 = vmatpush3.msra.mxu1 %v4504_v7  ;;  %v4577_v56 = vadd.f32 %v11236_v6, %v4576_v39  ;;  %10097 = vmatprep.mubr.msk.f32.mxu0 %vm10488_vm1, %v11822_v1 }
 0x361   : > { %v4649_v61 = vpop.f32.mrf.mxu1  ;;  %10093 = vmatmul.mubr.msk.f32.vlgmr.msra.gmra.mxu1 %vm1726_vm3, %v10464_v15  ;;  %v10019_v11 = vpop.f32.mrf.mxu0  ;;  %10100 = vmatprep.subr.mxu1 %v11822_v1 }
 0x362   : > { %v4650_v40 = vadd.f32 %v11236_v6, %v4649_v61  ;;  %10096 = vmatpush3.msra.mxu0 %v4577_v56  ;;  %10102 = vmatprep.mubr.msk.f32.mxu1 %vm10488_vm1, %v11822_v1 }
 0x363   : > { %v10024_v47 = vpop.f32.mrf.mxu1  ;;  %v4722_v42 = vpop.f32.mrf.mxu0  ;;  %10098 = vmatmul.mubr.msk.f32.vlgmr.msra.gmra.mxu0 %vm1726_vm3, %v10465_v37  ;;  %10105 = vmatprep.subr.mxu0 %v11822_v1 }
 0x364   : > { %10101 = vmatpush3.msra.mxu1 %v4650_v40  ;;  %v4723_v26 = vadd.f32 %v11236_v6, %v4722_v42  ;;  %10107 = vmatprep.mubr.msk.f32.mxu0 %vm10488_vm1, %v11822_v1 }
 0x365   : > { %v4795_v25 = vpop.f32.mrf.mxu1  ;;  %10103 = vmatmul.mubr.msk.f32.vlgmr.msra.gmra.mxu1 %vm1726_vm3, %v10466_v60  ;;  %v10029_v45 = vpop.f32.mrf.mxu0  ;;  %10110 = vmatprep.subr.mxu1 %v11822_v1 }
 0x366   : > { %v4796_v3 = vadd.f32 %v11236_v6, %v4795_v25  ;;  %10106 = vmatpush3.msra.mxu0 %v4723_v26  ;;  %10112 = vmatprep.mubr.msk.f32.mxu1 %vm10488_vm1, %v11822_v1 }
 0x367   : > { %v10034_v13 = vpop.f32.mrf.mxu1  ;;  %v4868_v20 = vpop.f32.mrf.mxu0  ;;  %10108 = vmatmul.mubr.msk.f32.vlgmr.msra.gmra.mxu0 %vm1726_vm3, %v10467_v44  ;;  %10115 = vmatprep.subr.mxu0 %v11822_v1 }
 0x368   : > { %10111 = vmatpush3.msra.mxu1 %v4796_v3  ;;  %v4869_v17 = vadd.f32 %v11236_v6, %v4868_v20  ;;  %10117 = vmatprep.mubr.msk.f32.mxu0 %vm10488_vm1, %v11822_v1 }
 0x369   : > { %v4941_v46 = vpop.f32.mrf.mxu1  ;;  %10113 = vmatmul.mubr.msk.f32.vlgmr.msra.gmra.mxu1 %vm1726_vm3, %v10468_v18  ;;  %v10039_v22 = vpop.f32.mrf.mxu0  ;;  %10120 = vmatprep.subr.mxu1 %v11822_v1 }
 0x36a   : > { %v4942_v51 = vadd.f32 %v11236_v6, %v4941_v46  ;;  %10116 = vmatpush3.msra.mxu0 %v4869_v17  ;;  %10122 = vmatprep.mubr.msk.f32.mxu1 %vm10488_vm1, %v11822_v1 }
 0x36b   : > { %v10044_v36 = vpop.f32.mrf.mxu1  ;;  %v5014_v24 = vpop.f32.mrf.mxu0  ;;  %10118 = vmatmul.mubr.msk.f32.vlgmr.msra.gmra.mxu0 %vm1726_vm3, %v10469_v21  ;;  %10125 = vmatprep.subr.mxu0 %v11822_v1 }
 0x36c   : > { %10121 = vmatpush3.msra.mxu1 %v4942_v51  ;;  %v5015_v23 = vadd.f32 %v11236_v6, %v5014_v24  ;;  %10127 = vmatprep.mubr.msk.f32.mxu0 %vm10488_vm1, %v11822_v1 }
 0x36d   : > { %v5087_v53 = vpop.f32.mrf.mxu1  ;;  %10123 = vmatmul.mubr.msk.f32.vlgmr.msra.gmra.mxu1 %vm1726_vm3, %v10470_v62  ;;  %v10049_v59 = vpop.f32.mrf.mxu0  ;;  %10130 = vmatprep.subr.mxu1 %v11822_v1 }
 0x36e   : > { %v5088_v27 = vadd.f32 %v11236_v6, %v5087_v53  ;;  %10126 = vmatpush3.msra.mxu0 %v5015_v23  ;;  %10132 = vmatprep.mubr.msk.f32.mxu1 %vm10488_vm1, %v11822_v1 }
 0x36f   : > { %v10054_v55 = vpop.f32.mrf.mxu1  ;;  %v5160_v29 = vpop.f32.mrf.mxu0  ;;  %10128 = vmatmul.mubr.msk.f32.vlgmr.msra.gmra.mxu0 %vm1726_vm3, %v10471_v28  ;;  %10135 = vmatprep.subr.mxu0 %v11822_v1 }
 0x370   : > { %10131 = vmatpush3.msra.mxu1 %v5088_v27  ;;  %v5161_v30 = vadd.f32 %v11236_v6, %v5160_v29  ;;  %10137 = vmatprep.mubr.msk.f32.mxu0 %vm10488_vm1, %v11822_v1 }
 0x371   : > { %10133 = vmatmul.mubr.msk.f32.vlgmr.msra.gmra.mxu1 %vm1726_vm3, %v10472_v32  ;;  %v10059_v49 = vpop.f32.mrf.mxu0  ;;  %10140 = vmatprep.subr.mxu1 %v11822_v1 }
 0x372   : > { %10136 = vmatpush3.msra.mxu0 %v5161_v30  ;;  %10142 = vmatprep.mubr.msk.f32.mxu1 %vm10488_vm1, %v11822_v1 }
 0x373   : > { %10138 = vmatmul.mubr.msk.f32.vlgmr.msra.gmra.mxu0 %vm1726_vm3, %v10473_v9  ;;  %10145 = vmatprep.subr.mxu0 %v11822_v1 }
 0x374   : > { %v5233_v52 = vpop.f32.mrf.mxu1  ;;  %10147 = vmatprep.mubr.msk.f32.mxu0 %vm10488_vm1, %v11822_v1 }
 0x375   : > { %v5234_v41 = vadd.f32 %v11236_v6, %v5233_v52 }
 0x376   : > { %v10064_v14 = vpop.f32.mrf.mxu1 }
 0x377   : > { %10141 = vmatpush3.msra.mxu1 %v5234_v41 }
 0x378   : > { %10143 = vmatmul.mubr.msk.f32.vlgmr.msra.gmra.mxu1 %vm1726_vm3, %v10474_v48  ;;  %10150 = vmatprep.subr.mxu1 %v11822_v1 }
 0x379   : > { %10152 = vmatprep.mubr.msk.f32.mxu1 %vm10488_vm1, %v11822_v1 }
 0x37e   : > { %v5306_v10 = vpop.f32.mrf.mxu0 }
 0x37f   : > { %v5307_v19 = vadd.f32 %v11236_v6, %v5306_v10 }
 0x380   : > { %v10069_v5 = vpop.f32.mrf.mxu0 }
 0x381   : > { %10146 = vmatpush3.msra.mxu0 %v5307_v19  ;;  %v11502_v5 = vld [vmem:[%s11792_s11] sm:$0xff] }
 0x382   : > { %10148 = vmatmul.mubr.msk.f32.vlgmr.msra.gmra.mxu0 %vm1726_vm3, %v10475_v33  ;;  %10155 = vmatprep.subr.mxu0 %v11822_v1 }
 0x383   : > { %10157 = vmatprep.mubr.msk.f32.mxu0 %vm10488_vm1, %v11822_v1 }
 0x384   : > { %v5379_v35 = vpop.f32.mrf.mxu1 }
 0x385   : > { %v5380_v31 = vadd.f32 %v11236_v6, %v5379_v35 }
 0x386   : > { %v10074_v57 = vpop.f32.mrf.mxu1 }
 0x387   : > { %10151 = vmatpush3.msra.mxu1 %v5380_v31 }
 0x388   : > { %10153 = vmatmul.mubr.msk.f32.vlgmr.msra.gmra.mxu1 %vm1726_vm3, %v10476_v2  ;;  %10160 = vmatprep.subr.mxu1 %v11822_v1 }
 0x389   : > { %10162 = vmatprep.mubr.msk.f32.mxu1 %vm10488_vm1, %v11822_v1 }
 0x390   : > { %v5452_v4 = vpop.f32.mrf.mxu0 }
 0x391   : > { %v5453_v34 = vadd.f32 %v11236_v6, %v5452_v4  ;;  %v5525_v54 = vpop.f32.mrf.mxu1 }
 0x392   : > { %v5526_v50 = vadd.f32 %v11236_v6, %v5525_v54  ;;  %v10079_v58 = vpop.f32.mrf.mxu0 }
 0x393   : > { %v10084_v38 = vpop.f32.mrf.mxu1  ;;  %10156 = vmatpush3.msra.mxu0 %v5453_v34 }
 0x394   : > { %10161 = vmatpush3.msra.mxu1 %v5526_v50  ;;  %10158 = vmatmul.mubr.msk.f32.vlgmr.msra.gmra.mxu0 %vm1726_vm3, %v10477_v63 }
 0x395   : > { %10163 = vmatmul.mubr.msk.f32.vlgmr.msra.gmra.mxu1 %vm1726_vm3, %v10478_v0  ;;  %10165 = vmatprep.subr.mxu0 %v11822_v1 }
 0x396   : > { %10170 = vmatprep.subr.mxu1 %v11822_v1  ;;  %10167 = vmatprep.mubr.msk.f32.mxu0 %vm10488_vm1, %v11822_v1 }
 0x397   : > { %10172 = vmatprep.mubr.msk.f32.mxu1 %vm10488_vm1, %v11822_v1 }
 0x41f   : > { %v11334_v6 = vpop.f32.mrf.mxu0 }
 0x420   : > { %v11815_v8 = vmax.f32 %v11334_v6, 0.0 }
 0x421   : > { %v11342_v7 = vpop.f32.mrf.mxu1  ;;  %v10089_v12 = vpop.f32.mrf.mxu0 }
 0x422   : > { %v11814_v39 = vmax.f32 %v11342_v7, 0.0  ;;  %10166 = vmatpush3.msra.mxu0 %v11815_v8 }
 0x423   : > { %v10094_v43 = vpop.f32.mrf.mxu1  ;;  %v11347_v56 = vpop.f32.mrf.mxu0  ;;  %10168 = vmatmul.mubr.msk.f32.vlgmr.msra.gmra.mxu0 %vm1726_vm3, %v11340_v16  ;;  %10175 = vmatprep.subr.mxu0 %v11822_v1 }
 0x424   : > { %10171 = vmatpush3.msra.mxu1 %v11814_v39  ;;  %v11813_v61 = vmax.f32 %v11347_v56, 0.0  ;;  %10177 = vmatprep.mubr.msk.f32.mxu0 %vm10488_vm1, %v11822_v1 }
 0x425   : > { %v11357_v15 = vpop.f32.mrf.mxu1  ;;  %10173 = vmatmul.mubr.msk.f32.vlgmr.msra.gmra.mxu1 %vm1726_vm3, %v11340_v16  ;;  %v10099_v11 = vpop.f32.mrf.mxu0  ;;  %10180 = vmatprep.subr.mxu1 %v11822_v1 }
 0x426   : > { %v11812_v40 = vmax.f32 %v11357_v15, 0.0  ;;  %10176 = vmatpush3.msra.mxu0 %v11813_v61  ;;  %10182 = vmatprep.mubr.msk.f32.mxu1 %vm10488_vm1, %v11822_v1 }
 0x427   : > { %v10104_v47 = vpop.f32.mrf.mxu1  ;;  %v11367_v42 = vpop.f32.mrf.mxu0  ;;  %10178 = vmatmul.mubr.msk.f32.vlgmr.msra.gmra.mxu0 %vm1726_vm3, %v11340_v16  ;;  %10185 = vmatprep.subr.mxu0 %v11822_v1 }
 0x428   : > { %10181 = vmatpush3.msra.mxu1 %v11812_v40  ;;  %v11811_v37 = vmax.f32 %v11367_v42, 0.0  ;;  %10187 = vmatprep.mubr.msk.f32.mxu0 %vm10488_vm1, %v11822_v1 }
 0x429   : > { %v11377_v26 = vpop.f32.mrf.mxu1  ;;  %10183 = vmatmul.mubr.msk.f32.vlgmr.msra.gmra.mxu1 %vm1726_vm3, %v11340_v16  ;;  %v10109_v25 = vpop.f32.mrf.mxu0  ;;  %10190 = vmatprep.subr.mxu1 %v11822_v1 }
 0x42a   : > { %v11810_v60 = vmax.f32 %v11377_v26, 0.0  ;;  %10186 = vmatpush3.msra.mxu0 %v11811_v37  ;;  %10192 = vmatprep.mubr.msk.f32.mxu1 %vm10488_vm1, %v11822_v1 }
 0x42b   : > { %v10114_v45 = vpop.f32.mrf.mxu1  ;;  %v11387_v3 = vpop.f32.mrf.mxu0  ;;  %10188 = vmatmul.mubr.msk.f32.vlgmr.msra.gmra.mxu0 %vm1726_vm3, %v11340_v16  ;;  %10195 = vmatprep.subr.mxu0 %v11822_v1 }
 0x42c   : > { %10191 = vmatpush3.msra.mxu1 %v11810_v60  ;;  %v11809_v13 = vmax.f32 %v11387_v3, 0.0  ;;  %10197 = vmatprep.mubr.msk.f32.mxu0 %vm10488_vm1, %v11822_v1 }
 0x42d   : > { %v11397_v20 = vpop.f32.mrf.mxu1  ;;  %10193 = vmatmul.mubr.msk.f32.vlgmr.msra.gmra.mxu1 %vm1726_vm3, %v11340_v16  ;;  %v10119_v44 = vpop.f32.mrf.mxu0  ;;  %10200 = vmatprep.subr.mxu1 %v11822_v1 }
 0x42e   : > { %v11808_v17 = vmax.f32 %v11397_v20, 0.0  ;;  %10196 = vmatpush3.msra.mxu0 %v11809_v13  ;;  %10202 = vmatprep.mubr.msk.f32.mxu1 %vm10488_vm1, %v11822_v1 }
 0x42f   : > { %v10124_v46 = vpop.f32.mrf.mxu1  ;;  %v11407_v18 = vpop.f32.mrf.mxu0  ;;  %10198 = vmatmul.mubr.msk.f32.vlgmr.msra.gmra.mxu0 %vm1726_vm3, %v11340_v16  ;;  %10205 = vmatprep.subr.mxu0 %v11822_v1 }
 0x430   : > { %10201 = vmatpush3.msra.mxu1 %v11808_v17  ;;  %v6657_v22 = vmax.f32 %v11407_v18, 0.0  ;;  %10207 = vmatprep.mubr.msk.f32.mxu0 %vm10488_vm1, %v11822_v1 }
 0x431   : > { %v11417_v51 = vpop.f32.mrf.mxu1  ;;  %10203 = vmatmul.mubr.msk.f32.vlgmr.msra.gmra.mxu1 %vm1726_vm3, %v11340_v16  ;;  %v10129_v36 = vpop.f32.mrf.mxu0  ;;  %10210 = vmatprep.subr.mxu1 %v11822_v1 }
 0x432   : > { %v6658_v24 = vmax.f32 %v11417_v51, 0.0  ;;  %10206 = vmatpush3.msra.mxu0 %v6657_v22  ;;  %10212 = vmatprep.mubr.msk.f32.mxu1 %vm10488_vm1, %v11822_v1 }
 0x433   : > { %v10134_v21 = vpop.f32.mrf.mxu1  ;;  %v11427_v23 = vpop.f32.mrf.mxu0  ;;  %10208 = vmatmul.mubr.msk.f32.vlgmr.msra.gmra.mxu0 %vm1726_vm3, %v11340_v16  ;;  %10215 = vmatprep.subr.mxu0 %v11822_v1 }
 0x434   : > { %10211 = vmatpush3.msra.mxu1 %v6658_v24  ;;  %v11821_v53 = vmax.f32 %v11427_v23, 0.0  ;;  %10217 = vmatprep.mubr.msk.f32.mxu0 %vm10488_vm1, %v11822_v1 }
 0x435   : > { %10213 = vmatmul.mubr.msk.f32.vlgmr.msra.gmra.mxu1 %vm1726_vm3, %v11340_v16  ;;  %v10139_v62 = vpop.f32.mrf.mxu0  ;;  %10220 = vmatprep.subr.mxu1 %v11822_v1 }
 0x436   : > { %10216 = vmatpush3.msra.mxu0 %v11821_v53  ;;  %10222 = vmatprep.mubr.msk.f32.mxu1 %vm10488_vm1, %v11822_v1 }
 0x437   : > { %10218 = vmatmul.mubr.msk.f32.vlgmr.msra.gmra.mxu0 %vm1726_vm3, %v11340_v16  ;;  %10225 = vmatprep.subr.mxu0 %v11822_v1 }
 0x438   : > { %v11447_v59 = vpop.f32.mrf.mxu1  ;;  %10227 = vmatprep.mubr.msk.f32.mxu0 %vm10488_vm1, %v11822_v1 }
 0x439   : > { %v11820_v27 = vmax.f32 %v11447_v59, 0.0 }
 0x43a   : > { %v10144_v55 = vpop.f32.mrf.mxu1 }
 0x43b   : > { %10221 = vmatpush3.msra.mxu1 %v11820_v27 }
 0x43c   : > { %10223 = vmatmul.mubr.msk.f32.vlgmr.msra.gmra.mxu1 %vm1726_vm3, %v11340_v16  ;;  %10230 = vmatprep.subr.mxu1 %v11822_v1 }
 0x43d   : > { %10232 = vmatprep.mubr.msk.f32.mxu1 %vm10488_vm1, %v11822_v1 }
 0x442   : > { %v11459_v29 = vpop.f32.mrf.mxu0 }
 0x443   : > { %v11819_v28 = vmax.f32 %v11459_v29, 0.0 }
 0x444   : > { %v10149_v30 = vpop.f32.mrf.mxu0 }
 0x445   : > { %10226 = vmatpush3.msra.mxu0 %v11819_v28 }
 0x446   : > { %10228 = vmatmul.mubr.msk.f32.vlgmr.msra.gmra.mxu0 %vm1726_vm3, %v11340_v16  ;;  %10235 = vmatprep.subr.mxu0 %v11822_v1 }
 0x447   : > { %10237 = vmatprep.mubr.msk.f32.mxu0 %vm10488_vm1, %v11822_v1 }
 0x448   : > { %v11469_v32 = vpop.f32.mrf.mxu1 }
 0x449   : > { %v11818_v49 = vmax.f32 %v11469_v32, 0.0 }
 0x44a   : > { %v10154_v9 = vpop.f32.mrf.mxu1 }
 0x44b   : > { %10231 = vmatpush3.msra.mxu1 %v11818_v49 }
 0x44c   : > { %10233 = vmatmul.mubr.msk.f32.vlgmr.msra.gmra.mxu1 %vm1726_vm3, %v11340_v16  ;;  %10240 = vmatprep.subr.mxu1 %v11822_v1 }
 0x44d   : > { %10242 = vmatprep.mubr.msk.f32.mxu1 %vm10488_vm1, %v11822_v1 }
 0x454   : > { %v11479_v52 = vpop.f32.mrf.mxu0 }
 0x455   : > { %v11817_v41 = vmax.f32 %v11479_v52, 0.0  ;;  %v11482_v14 = vpop.f32.mrf.mxu1 }
 0x456   : > { %v11816_v48 = vmax.f32 %v11482_v14, 0.0  ;;  %v10159_v10 = vpop.f32.mrf.mxu0 }
 0x457   : > { %v10164_v19 = vpop.f32.mrf.mxu1  ;;  %10236 = vmatpush3.msra.mxu0 %v11817_v41 }
 0x458   : > { %10241 = vmatpush3.msra.mxu1 %v11816_v48  ;;  %10238 = vmatmul.mubr.msk.f32.vlgmr.msra.gmra.mxu0 %vm1726_vm3, %v11340_v16 }
 0x459   : > { %10243 = vmatmul.mubr.msk.f32.vlgmr.msra.gmra.mxu1 %vm1726_vm3, %v11340_v16  ;;  %10245 = vmatprep.subr.mxu0 %v11822_v1 }
 0x45a   : > { %10250 = vmatprep.subr.mxu1 %v11822_v1  ;;  %10247 = vmatprep.mubr.msk.f32.mxu0 %vm10488_vm1, %v11822_v1 }
 0x45b   : > { %10252 = vmatprep.mubr.msk.f32.mxu1 %vm10488_vm1, %v11822_v1  ;;  %10246 = vmatpush3.msra.mxu0 %v11502_v5 }
 0x45c   : > { %10251 = vmatpush3.msra.mxu1 %v11502_v5  ;;  %10255 = vmatprep.subr.mxu0 %v11822_v1 }
 0x45d   : > { %10260 = vmatprep.subr.mxu1 %v11822_v1 }
 0x4e3   : > { %v11508_v33 = vpop.f32.mrf.mxu0 }
 0x4e4   : > { %v7788_v43 = vsel %vm1726_vm3, %v11508_v33, -inf }
 0x4e5   : > { %v11510_v35 = vpop.f32.mrf.mxu1  ;;  %v10169_v31 = vpop.f32.mrf.mxu0  ;;  %v7789_v46 = vrot.slane %v7788_v43, 4 }
 0x4e6   : > { %v7795_v25 = vsel %vm1726_vm3, %v11510_v35, -inf }
 0x4e7   : > { %v10174_v57 = vpop.f32.mrf.mxu1  ;;  %v11512_v2 = vpop.f32.mrf.mxu0  ;;  %v7796_v30 = vrot.slane %v7795_v25, 4 }
 0x4e8   : > { %v7802_v36 = vsel %vm1726_vm3, %v11512_v2, -inf  ;;  %v7790_v57 = vmax.f32 %v7788_v43, %v7789_v46 }
 0x4e9   : > { %v11514_v4 = vpop.f32.mrf.mxu1  ;;  %v10179_v34 = vpop.f32.mrf.mxu0 }
 0x4ea   : > { %v7809_v9 = vsel %vm1726_vm3, %v11514_v4, -inf  ;;  %v7803_v34 = vrot.slane %v7802_v36, 4  ;;  %v7791_v43 = vrot.slane %v7790_v57, 2 }
 0x4eb   : > { %v10184_v54 = vpop.f32.mrf.mxu1  ;;  %v11516_v50 = vpop.f32.mrf.mxu0 }
 0x4ec   : > { %v7804_v46 = vmax.f32 %v7802_v36, %v7803_v34  ;;  %v7792_v28 = vmax.f32 %v7790_v57, %v7791_v43 }
 0x4ed   : > { %v11518_v58 = vpop.f32.mrf.mxu1  ;;  %v10189_v38 = vpop.f32.mrf.mxu0 }
 0x4ef   : > { %v10194_v63 = vpop.f32.mrf.mxu1  ;;  %v11520_v0 = vpop.f32.mrf.mxu0 }
 0x4f1   : > { %v11522_v16 = vpop.f32.mrf.mxu1  ;;  %v10199_v12 = vpop.f32.mrf.mxu0 }
 0x4f2   : > { %v7797_v12 = vmax.f32 %v7795_v25, %v7796_v30 }
 0x4f3   : > { %v10204_v11 = vpop.f32.mrf.mxu1  ;;  %v7294_v47 = vpop.f32.mrf.mxu0 }
 0x4f4   : > { %v7844_v21 = vsel %vm1726_vm3, %v7294_v47, -inf  ;;  %v7810_v11 = vrot.slane %v7809_v9, 4  ;;  %v7798_v25 = vrot.slane %v7797_v12, 2 }
 0x4f5   : > { %v11528_v45 = vpop.f32.mrf.mxu1  ;;  %v10209_v44 = vpop.f32.mrf.mxu0  ;;  %v7845_v10 = vrot.slane %v7844_v21, 4 }
 0x4f6   : > { %v7851_v19 = vsel %vm1726_vm3, %v11528_v45, -inf  ;;  %v7816_v44 = vsel %vm1726_vm3, %v11516_v50, -inf  ;;  %v7811_v30 = vmax.f32 %v7809_v9, %v7810_v11  ;;  %v7799_v34 = vmax.f32 %v7797_v12, %v7798_v25 }
 0x4f7   : > { %v10214_v62 = vpop.f32.mrf.mxu1  ;;  %v11533_v55 = vpop.f32.mrf.mxu0  ;;  %v7846_v54 = vmax.f32 %v7844_v21, %v7845_v10  ;;  %v7852_v38 = vrot.slane %v7851_v19, 4  ;;  %v7817_v39 = vrot.slane %v7816_v44, 4  ;;  %v7793_v11 = vrot.slane %v7792_v28, 1 }
 0x4f8   : > { %v7858_v63 = vsel %vm1726_vm3, %v11533_v55, -inf }
 0x4f9   : > { %v10219_v31 = vpop.f32.mrf.mxu0  ;;  %v7847_v17 = vrot.slane %v7846_v54, 2  ;;  %v7853_v13 = vmax.f32 %v7851_v19, %v7852_v38  ;;  %v7859_v60 = vrot.slane %v7858_v63, 4  ;;  %v7805_v19 = vrot.slane %v7804_v46, 2 }
 0x4fa   : > { %v7823_v38 = vsel %vm1726_vm3, %v11518_v58, -inf }
 0x4fb   : > { %v7848_v10 = vmax.f32 %v7846_v54, %v7847_v17  ;;  %v7854_v37 = vrot.slane %v7853_v13, 2  ;;  %v7860_v40 = vmax.f32 %v7858_v63, %v7859_v60  ;;  %v7812_v17 = vrot.slane %v7811_v30, 2 }
 0x4fc   : > { %v11543_v62 = vpop.f32.mrf.mxu1  ;;  %v7818_v60 = vmax.f32 %v7816_v44, %v7817_v39  ;;  %v7806_v1 = vmax.f32 %v7804_v46, %v7805_v19  ;;  %v7837_v44 = vsel %vm1726_vm3, %v11522_v16, -inf }
 0x4fd   : > { %v7865_v31 = vsel %vm1726_vm3, %v11543_v62, -inf  ;;  %v7849_v8 = vrot.slane %v7848_v10, 1  ;;  %v7855_v48 = vmax.f32 %v7853_v13, %v7854_v37  ;;  %v7861_v41 = vrot.slane %v7860_v40, 2 }
 0x4fe   : > { %v10224_v21 = vpop.f32.mrf.mxu1  ;;  %v7866_v61 = vrot.slane %v7865_v31, 4  ;;  %v7824_v37 = vrot.slane %v7823_v38, 4 }
 0x4ff   : > { %v7850_v27 = vmax.f32 %v7848_v10, %v7849_v8  ;;  %v7856_v53 = vrot.slane %v7855_v48, 1  ;;  %v7862_v36 = vmax.f32 %v7860_v40, %v7861_v41  ;;  %v7800_v8 = vrot.slane %v7799_v34, 1 }
 0x500   : > { %v7867_v49 = vmax.f32 %v7865_v31, %v7866_v61  ;;  %v7813_v10 = vmax.f32 %v7811_v30, %v7812_v17  ;;  %v7830_v40 = vsel %vm1726_vm3, %v11520_v0, -inf  ;;  %v7825_v12 = vmax.f32 %v7823_v38, %v7824_v37 }
 0x501   : > { %v7908_v63 = vsub.f32 %v7294_v47, %v7850_v27  ;;  %v7857_v21 = vmax.f32 %v7855_v48, %v7856_v53  ;;  %v7863_v9 = vrot.slane %v7862_v36, 1  ;;  %v7819_v27 = vrot.slane %v7818_v60, 2 }
 0x502   : > { %v7868_v54 = vrot.slane %v7867_v49, 2  ;;  %v7794_v47 = vmax.f32 %v7792_v28, %v7793_v11  ;;  %v7801_v30 = vmax.f32 %v7799_v34, %v7800_v8  ;;  %v7814_v19 = vrot.slane %v7813_v10, 1 }
 0x503   : > { %v7932_v57 = vmul.f32 1.442695, %v7908_v63  ;;  %v7909_v31 = vsub.f32 %v11528_v45, %v7857_v21  ;;  %v7864_v43 = vmax.f32 %v7862_v36, %v7863_v9  ;;  %v7831_v36 = vrot.slane %v7830_v40, 4 }
 0x504   : > { %v7869_v13 = vmax.f32 %v7867_v49, %v7868_v54  ;;  %v7807_v49 = vrot.slane %v7806_v1, 1  ;;  %v7820_v54 = vmax.f32 %v7818_v60, %v7819_v27  ;;  %v7826_v38 = vrot.slane %v7825_v12, 2 }
 0x505   : > { %10399 = vpow2.f32 %v7932_v57  ;;  %v7934_v53 = vmul.f32 1.442695, %v7909_v31  ;;  %v7910_v48 = vsub.f32 %v11533_v55, %v7864_v43  ;;  %v7838_v63 = vrot.slane %v7837_v44, 4 }
 0x506   : > { %v11549_v61 = vpop.f32.mrf.mxu0  ;;  %v7870_v41 = vrot.slane %v7869_v13, 1  ;;  %v7900_v9 = vsub.f32 %v11508_v33, %v7794_v47  ;;  %v7808_v11 = vmax.f32 %v7806_v1, %v7807_v49  ;;  %v7901_v57 = vsub.f32 %v11510_v35, %v7801_v30 }
 0x507   : > { %10401 = vpow2.f32 %v7934_v53  ;;  %v7936_v45 = vmul.f32 1.442695, %v7910_v48  ;;  %v7872_v25 = vsel %vm1726_vm3, %v11549_v61, -inf  ;;  %v7815_v34 = vmax.f32 %v7813_v10, %v7814_v19 }
 0x508   : > { %v10229_v39 = vpop.f32.mrf.mxu0  ;;  %v7871_v46 = vmax.f32 %v7869_v13, %v7870_v41  ;;  %v7873_v55 = vrot.slane %v7872_v25, 4  ;;  %v7832_v31 = vmax.f32 %v7830_v40, %v7831_v36  ;;  %v7821_v43 = vrot.slane %v7820_v54, 1 }
 0x509   : > { %10403 = vpow2.f32 %v7936_v45  ;;  %v7827_v8 = vmax.f32 %v7825_v12, %v7826_v38  ;;  %v7839_v60 = vmax.f32 %v7837_v44, %v7838_v63  ;;  %v7916_v41 = vmul.f32 1.442695, %v7900_v9 }
 0x50a   : > { %v7911_v28 = vsub.f32 %v11543_v62, %v7871_v46  ;;  %v7874_v13 = vmax.f32 %v7872_v25, %v7873_v55  ;;  %v7902_v62 = vsub.f32 %v11512_v2, %v7808_v11  ;;  %v7918_v27 = vmul.f32 1.442695, %v7901_v57 }
 0x50b   : > { %v7903_v53 = vsub.f32 %v11514_v4, %v7815_v34  ;;  %v7833_v48 = vrot.slane %v7832_v31, 2  ;;  %v7822_v33 = vmax.f32 %v7820_v54, %v7821_v43  ;;  %v7828_v10 = vrot.slane %v7827_v8, 1 }
 0x50c   : > { %v11559_v17 = vpop.f32.mrf.mxu1  ;;  %v7938_v37 = vmul.f32 1.442695, %v7911_v28  ;;  %v7875_v39 = vrot.slane %v7874_v13, 2  ;;  %v7840_v40 = vrot.slane %v7839_v60, 2  ;;  %v7920_v12 = vmul.f32 1.442695, %v7902_v62 }
 0x50d   : > { %v7879_v47 = vsel %vm1726_vm3, %v11559_v17, -inf  ;;  %v7922_v4 = vmul.f32 1.442695, %v7903_v53  ;;  %v7834_v46 = vmax.f32 %v7832_v31, %v7833_v48  ;;  %v7904_v19 = vsub.f32 %v11516_v50, %v7822_v33 }
 0x50e   : > { %v10234_v21 = vpop.f32.mrf.mxu1  ;;  %10405 = vpow2.f32 %v7938_v37  ;;  %v7876_v1 = vmax.f32 %v7874_v13, %v7875_v39  ;;  %v7880_v49 = vrot.slane %v7879_v47, 4  ;;  %v7829_v63 = vmax.f32 %v7827_v8, %v7828_v10 }
 0x50f   : > { %10407 = vpow2.f32 %v7916_v41  ;;  %v7841_v21 = vmax.f32 %v7839_v60, %v7840_v40  ;;  %v7835_v34 = vrot.slane %v7834_v46, 1  ;;  %v7924_v41 = vmul.f32 1.442695, %v7904_v19 }
 0x510   : > { %v7877_v44 = vrot.slane %v7876_v1, 1  ;;  %10409 = vpow2.f32 %v7918_v27  ;;  %v7881_v28 = vmax.f32 %v7879_v47, %v7880_v49  ;;  %v7905_v60 = vsub.f32 %v11518_v58, %v7829_v63 }
 0x511   : > { %10411 = vpow2.f32 %v7920_v12  ;;  %v7842_v53 = vrot.slane %v7841_v21, 1  ;;  %v7836_v10 = vmax.f32 %v7834_v46, %v7835_v34 }
 0x512   : > { %v11568_v35 = vpop.eup %10399  ;;  %v7878_v54 = vmax.f32 %v7876_v1, %v7877_v44  ;;  %10413 = vpow2.f32 %v7922_v4  ;;  %v7882_v27 = vrot.slane %v7881_v28, 2  ;;  %v7926_v34 = vmul.f32 1.442695, %v7905_v60 }
 0x513   : > { %v8004_v2 = vsel %vm1726_vm3, %v11568_v35, 0.0  ;;  %v7843_v63 = vmax.f32 %v7841_v21, %v7842_v53 }
 0x514   : > { %v11572_v45 = vpop.eup %10401  ;;  %v8005_v25 = vrot.slane %v8004_v2, 4  ;;  %v7912_v50 = vsub.f32 %v11549_v61, %v7878_v54  ;;  %v7883_v47 = vmax.f32 %v7881_v28, %v7882_v27 }
 0x515   : > { %v8011_v36 = vsel %vm1726_vm3, %v11572_v45, 0.0  ;;  %v7907_v53 = vsub.f32 %v11522_v16, %v7843_v63 }
 0x516   : > { %v11581_v38 = vpop.eup %10403  ;;  %v8006_v9 = vadd.f32 %v8005_v25, %v8004_v2  ;;  %v8012_v11 = vrot.slane %v8011_v36, 4  ;;  %v7940_v39 = vmul.f32 1.442695, %v7912_v50  ;;  %v7884_v44 = vrot.slane %v7883_v47, 1 }
 0x517   : > { %v8018_v13 = vsel %vm1726_vm3, %v11581_v38, 0.0 }
 0x518   : > { %v11574_v30 = vpop.f32.mrf.mxu0  ;;  %v8007_v31 = vrot.slane %v8006_v9, 2  ;;  %v8013_v43 = vadd.f32 %v8012_v11, %v8011_v36  ;;  %v8019_v62 = vrot.slane %v8018_v13, 4  ;;  %10415 = vpow2.f32 %v7940_v39 }
 0x519   : > { %v11579_v55 = vpop.f32.mrf.mxu1  ;;  %v7886_v4 = vsel %vm1726_vm3, %v11574_v30, -inf  ;;  %v7885_v11 = vmax.f32 %v7883_v47, %v7884_v44  ;;  %v7906_v39 = vsub.f32 %v11520_v0, %v7836_v10  ;;  %v7930_v10 = vmul.f32 1.442695, %v7907_v53 }
 0x51a   : > { %v10239_v37 = vpop.f32.mrf.mxu0  ;;  %v8008_v48 = vadd.f32 %v8007_v31, %v8006_v9  ;;  %v8014_v33 = vrot.slane %v8013_v43, 2  ;;  %v8020_v1 = vadd.f32 %v8019_v62, %v8018_v13  ;;  %v7893_v58 = vsel %vm1726_vm3, %v11579_v55, -inf }
 0x51b   : > { %v10244_v57 = vpop.f32.mrf.mxu1  ;;  %v11586_v8 = vpop.eup %10405  ;;  %v7887_v54 = vrot.slane %v7886_v4, 4  ;;  %v7894_v28 = vrot.slane %v7893_v58, 4 }
 0x51c   : > { %v8025_v61 = vsel %vm1726_vm3, %v11586_v8, 0.0  ;;  %v8009_v40 = vrot.slane %v8008_v48, 1  ;;  %v8015_v49 = vadd.f32 %v8014_v33, %v8013_v43  ;;  %v8021_v2 = vrot.slane %v8020_v1, 2  ;;  %v11595_v46 = vpop.eup %10407 }
 0x51d   : > { %v8026_v12 = vrot.slane %v8025_v61, 4  ;;  %v7888_v50 = vmax.f32 %v7886_v4, %v7887_v54  ;;  %v11597_v57 = vpop.eup %10409  ;;  %v7913_v43 = vsub.f32 %v11559_v17, %v7885_v11  ;;  %v7895_v62 = vmax.f32 %v7893_v58, %v7894_v28 }
 0x51e   : > { %v8010_v25 = vadd.f32 %v8009_v40, %v8008_v48  ;;  %v8016_v19 = vrot.slane %v8015_v49, 1  ;;  %v8022_v9 = vadd.f32 %v8021_v2, %v8020_v1  ;;  %v7955_v54 = vsel %vm1726_vm3, %v11597_v57, 0.0 }
 0x51f   : > { %v8027_v36 = vadd.f32 %v8026_v12, %v8025_v61  ;;  %v7889_v27 = vrot.slane %v7888_v50, 2  ;;  %v7942_v33 = vmul.f32 1.442695, %v7913_v43  ;;  %v7896_v1 = vrot.slane %v7895_v62, 2  ;;  %v11602_v61 = vpop.eup %10411 }
 0x520   : > { %10417 = vrcp.f32 %v8010_v25  ;;  %v8017_v37 = vadd.f32 %v8016_v19, %v8015_v49  ;;  %v8023_v31 = vrot.slane %v8022_v9, 1  ;;  %v11604_v60 = vpop.eup %10413  ;;  %v7928_v49 = vmul.f32 1.442695, %v7906_v39 }
 0x521   : > { %v8028_v13 = vrot.slane %v8027_v36, 2  ;;  %v7890_v40 = vmax.f32 %v7888_v50, %v7889_v27  ;;  %v7897_v17 = vmax.f32 %v7895_v62, %v7896_v1  ;;  %v7962_v39 = vsel %vm1726_vm3, %v11602_v61, 0.0 }
 0x522   : > { %10419 = vrcp.f32 %v8017_v37  ;;  %v8024_v48 = vadd.f32 %v8023_v31, %v8022_v9 }
 0x523   : > { %v8029_v21 = vadd.f32 %v8028_v13, %v8027_v36  ;;  %10421 = vpow2.f32 %v7924_v41  ;;  %v7891_v0 = vrot.slane %v7890_v40, 1  ;;  %v7898_v2 = vrot.slane %v7897_v17, 1 }
 0x524   : > { %10423 = vrcp.f32 %v8024_v48  ;;  %v7948_v36 = vsel %vm1726_vm3, %v11595_v46, 0.0 }
 0x525   : > { %v8030_v47 = vrot.slane %v8029_v21, 1  ;;  %10425 = vpow2.f32 %v7942_v33  ;;  %v11606_v16 = vpop.eup %10415  ;;  %v7892_v44 = vmax.f32 %v7890_v40, %v7891_v0  ;;  %v7899_v4 = vmax.f32 %v7897_v17, %v7898_v2 }
 0x526   : > { %10427 = vpow2.f32 %v7926_v34  ;;  %v8032_v41 = vsel %vm1726_vm3, %v11606_v16, 0.0  ;;  %v7949_v34 = vrot.slane %v7948_v36, 4 }
 0x527   : > { %v8031_v12 = vadd.f32 %v8030_v47, %v8029_v21  ;;  %v8033_v58 = vrot.slane %v8032_v41, 4  ;;  %v7914_v25 = vsub.f32 %v11574_v30, %v7892_v44  ;;  %v7915_v19 = vsub.f32 %v11579_v55, %v7899_v4 }
 0x528   : > { %v7956_v30 = vrot.slane %v7955_v54, 4  ;;  %v7969_v21 = vsel %vm1726_vm3, %v11604_v60, 0.0  ;;  %v7950_v18 = vadd.f32 %v7949_v34, %v7948_v36  ;;  %v7963_v47 = vrot.slane %v7962_v39, 4 }
 0x529   : > { %10429 = vrcp.f32 %v8031_v12  ;;  %v8034_v63 = vadd.f32 %v8033_v58, %v8032_v41  ;;  %v7944_v9 = vmul.f32 1.442695, %v7914_v25  ;;  %v7946_v28 = vmul.f32 1.442695, %v7915_v19 }
 0x52a   : > { %10431 = vpow2.f32 %v7928_v49  ;;  %v7970_v40 = vrot.slane %v7969_v21, 4  ;;  %v7951_v44 = vrot.slane %v7950_v18, 2  ;;  %v7964_v19 = vadd.f32 %v7963_v47, %v7962_v39 }
 0x52b   : > { %10433 = vpow2.f32 %v7930_v10  ;;  %v8035_v37 = vrot.slane %v8034_v63, 2 }
 0x52c   : > { %10435 = vpow2.f32 %v7944_v9 }
 0x52d   : > { %v10418_v11 = vpop.eup %10417  ;;  %10437 = vpow2.f32 %v7946_v28  ;;  %v8036_v31 = vadd.f32 %v8035_v37, %v8034_v63  ;;  %v7952_v37 = vadd.f32 %v7951_v44, %v7950_v18 }
 0x52e   : > { %v8084_v13 = vmul.f32 %v10418_v11, %v11568_v35 }
 0x52f   : > { %v10420_v50 = vpop.eup %10419  ;;  %v8037_v35 = vrot.slane %v8036_v31, 1 }
 0x530   : > { %v8100_v55 = vmul.f32 %v8084_v13, %v6657_v22  ;;  %v8085_v43 = vmul.f32 %v10420_v50, %v11572_v45  ;;  %v11620_v62 = vpop.eup %10421  ;;  %v7957_v22 = vadd.f32 %v7956_v30, %v7955_v54  ;;  %v11837_v45 = vmov 0.0  }
 0x531   : > { %v10424_v27 = vpop.eup %10423  ;;  %v8038_v17 = vadd.f32 %v8037_v35, %v8036_v31  ;;  %v7976_v49 = vsel %vm1726_vm3, %v11620_v62, 0.0  ;;  %v11839_v54 = vmax.f32 %v11447_v59, 0.0  ;;  %v7965_v30 = vrot.slane %v7964_v19, 2 }
 0x532   : > { %10248 = vmatmul.mubr.msk.f32.vlgmr.msra.gmra.mxu0 %vm1726_vm3, %v8100_v55  ;;  %v8101_v53 = vmul.f32 %v8085_v43, %v6658_v24  ;;  %v11629_v48 = vpop.eup %10425  ;;  %v8086_v33 = vmul.f32 %v10424_v27, %v11581_v38  ;;  %v11838_v38 = vmax.f32 %v11427_v23, 0.0  ;;  %v7958_v41 = vrot.slane %v7957_v22, 2 }
 0x533   : > { %10256 = vmatpush3.msra.mxu0 %v11502_v5  ;;  %10257 = vmatprep.mubr.msk.f32.mxu0 %vm10488_vm1, %v11837_v45  ;;  %v11635_v1 = vpop.eup %10427  ;;  %v8039_v51 = vsel %vm1726_vm3, %v11629_v48, 0.0  ;;  %10439 = vrcp.f32 %v8038_v17  ;;  %v7971_v23 = vadd.f32 %v7970_v40, %v7969_v21  ;;  %v7977_v36 = vrot.slane %v7976_v49, 4 }
 0x534   : > { %10253 = vmatmul.mubr.msk.f32.vlgmr.msra.gmra.mxu1 %vm1726_vm3, %v8101_v53  ;;  %10265 = vmatprep.subr.mxu0 %v11837_v45  ;;  %v8040_v12 = vrot.slane %v8039_v51, 4  ;;  %v8102_v0 = vmul.f32 %v8086_v33, %v11838_v38  ;;  %v7983_v4 = vsel %vm1726_vm3, %v11635_v1, 0.0  ;;  %v7959_v13 = vadd.f32 %v7958_v41, %v7957_v22 }
 0x535   : > { %10261 = vmatpush3.msra.mxu1 %v11502_v5  ;;  %10262 = vmatprep.mubr.msk.f32.mxu1 %vm10488_vm1, %v11837_v45  ;;  %v7984_v9 = vrot.slane %v7983_v4, 4  ;;  %v7972_v31 = vrot.slane %v7971_v23, 2  ;;  %v7978_v55 = vadd.f32 %v7977_v36, %v7976_v49  ;;  %v7953_v33 = vrot.slane %v7952_v37, 1 }
 0x536   : > { %v10430_v24 = vpop.eup %10429  ;;  %10270 = vmatprep.subr.mxu1 %v11837_v45  ;;  %v8041_v58 = vadd.f32 %v8040_v12, %v8039_v51  ;;  %10258 = vmatmul.mubr.msk.f32.vlgmr.msra.gmra.mxu0 %vm1726_vm3, %v8102_v0  ;;  %v7960_v17 = vrot.slane %v7959_v13, 1  ;;  %v7966_v51 = vadd.f32 %v7965_v30, %v7964_v19 }
 0x537   : > { %v8087_v10 = vmul.f32 %v10430_v24, %v11586_v8  ;;  %v11650_v2 = vpop.eup %10431  ;;  %10266 = vmatpush3.msra.mxu0 %v11502_v5  ;;  %10267 = vmatprep.mubr.msk.f32.mxu0 %vm10488_vm1, %v11837_v45  ;;  %v7985_v53 = vadd.f32 %v7984_v9, %v7983_v4  ;;  %v7973_v24 = vadd.f32 %v7972_v31, %v7971_v23  ;;  %v7979_v12 = vrot.slane %v7978_v55, 2 }
 0x538   : > { %v11655_v25 = vpop.eup %10433  ;;  %v8042_v63 = vrot.slane %v8041_v58, 2  ;;  %10275 = vmatprep.subr.mxu0 %v11837_v45  ;;  %v7990_v11 = vsel %vm1726_vm3, %v11650_v2, 0.0  ;;  %v7954_v36 = vadd.f32 %v7953_v33, %v7952_v37  ;;  %v7961_v4 = vadd.f32 %v7960_v17, %v7959_v13 }
 0x539   : > { %v8103_v8 = vmul.f32 %v8087_v10, %v11839_v54  ;;  %v11666_v28 = vpop.eup %10435  ;;  %v7997_v59 = vsel %vm1726_vm3, %v11655_v25, 0.0  ;;  %v7991_v39 = vrot.slane %v7990_v11, 4  ;;  %v7986_v10 = vrot.slane %v7985_v53, 2 }
 0x53a   : > { %v8043_v50 = vadd.f32 %v8042_v63, %v8041_v58  ;;  %v11673_v34 = vpop.eup %10437  ;;  %v8046_v43 = vsel %vm1726_vm3, %v11666_v28, 0.0  ;;  %v7998_v18 = vrot.slane %v7997_v59, 4 }
 0x53b   : > { %10263 = vmatmul.mubr.msk.f32.vlgmr.msra.gmra.mxu1 %vm1726_vm3, %v8103_v8  ;;  %v8047_v27 = vrot.slane %v8046_v43, 4  ;;  %v8053_v35 = vsel %vm1726_vm3, %v11673_v34, 0.0  ;;  %v7992_v38 = vadd.f32 %v7991_v39, %v7990_v11  ;;  %v7967_v8 = vrot.slane %v7966_v51, 1 }
 0x53c   : > { %10271 = vmatpush3.msra.mxu1 %v11502_v5  ;;  %10272 = vmatprep.mubr.msk.f32.mxu1 %vm10488_vm1, %v11837_v45  ;;  %v8044_v21 = vrot.slane %v8043_v50, 1  ;;  %v8054_v22 = vrot.slane %v8053_v35, 4  ;;  %v7999_v44 = vadd.f32 %v7998_v18, %v7997_v59  ;;  %v7987_v30 = vadd.f32 %v7986_v10, %v7985_v53 }
 0x53d   : > { %10280 = vmatprep.subr.mxu1 %v11837_v45  ;;  %v8048_v40 = vadd.f32 %v8047_v27, %v8046_v43  ;;  %v7980_v43 = vadd.f32 %v7979_v12, %v7978_v55  ;;  %v7993_v19 = vrot.slane %v7992_v38, 2  ;;  %v11840_v39 = vmax.f32 %v11459_v29, 0.0 }
 0x53e   : > { %v8045_v47 = vadd.f32 %v8044_v21, %v8043_v50  ;;  %v8055_v49 = vadd.f32 %v8054_v22, %v8053_v35  ;;  %v7974_v50 = vrot.slane %v7973_v24, 1  ;;  %v8000_v31 = vrot.slane %v7999_v44, 2 }
 0x53f   : > { %v8049_v0 = vrot.slane %v8048_v40, 2  ;;  %v7968_v13 = vadd.f32 %v7967_v8, %v7966_v51  ;;  %v7981_v27 = vrot.slane %v7980_v43, 1  ;;  %v7994_v35 = vadd.f32 %v7993_v19, %v7992_v38 }
 0x540   : > { %10441 = vrcp.f32 %v8045_v47  ;;  %v8056_v41 = vrot.slane %v8055_v49, 2  ;;  %v10440_v58 = vpop.eup %10439  ;;  %v7988_v55 = vrot.slane %v7987_v30, 1  ;;  %v8001_v53 = vadd.f32 %v8000_v31, %v7999_v44 }
 0x541   : > { %v8050_v54 = vadd.f32 %v8049_v0, %v8048_v40  ;;  %v8088_v9 = vmul.f32 %v10440_v58, %v11606_v16  ;;  %10443 = vrcp.f32 %v7954_v36  ;;  %v7975_v16 = vadd.f32 %v7974_v50, %v7973_v24 }
 0x542   : > { %v8057_v63 = vadd.f32 %v8056_v41, %v8055_v49  ;;  %10445 = vrcp.f32 %v7961_v4  ;;  %v7982_v29 = vadd.f32 %v7981_v27, %v7980_v43  ;;  %v7995_v18 = vrot.slane %v7994_v35, 1 }
 0x543   : > { %v8051_v23 = vrot.slane %v8050_v54, 1  ;;  %v8104_v21 = vmul.f32 %v8088_v9, %v11840_v39  ;;  %v7989_v33 = vadd.f32 %v7988_v55, %v7987_v30  ;;  %v8002_v47 = vrot.slane %v8001_v53, 1 }
 0x544   : > { %v8058_v11 = vrot.slane %v8057_v63, 1  ;;  %v7996_v17 = vadd.f32 %v7995_v18, %v7994_v35  ;;  %v11841_v51 = vmax.f32 %v11469_v32, 0.0  ;;  %v11842_v44 = vmax.f32 %v11479_v52, 0.0 }
 0x545   : > { %v8052_v59 = vadd.f32 %v8051_v23, %v8050_v54  ;;  %10268 = vmatmul.mubr.msk.f32.vlgmr.msra.gmra.mxu0 %vm1726_vm3, %v8104_v21  ;;  %v8003_v24 = vadd.f32 %v8002_v47, %v8001_v53  ;;  %v11843_v54 = vmax.f32 %v11482_v14, 0.0  ;;  %v11844_v52 = vmax.f32 %v11334_v6, 0.0  ;;  %v9538_v47 = vld [vmem:[%s11793_s12] ss:$0 sm:$0xff] }
 0x546   : > { %v8059_v37 = vadd.f32 %v8058_v11, %v8057_v63  ;;  %10276 = vmatpush3.msra.mxu0 %v11502_v5  ;;  %10277 = vmatprep.mubr.msk.f32.mxu0 %vm10488_vm1, %v11837_v45  ;;  %v11845_v14 = vmax.f32 %v11342_v7, 0.0  ;;  %v11846_v6 = vmax.f32 %v11347_v56, 0.0  ;;  %v11848_v56 = vmax.f32 %v11367_v42, 0.0 }
 0x547   : > { %10447 = vrcp.f32 %v8052_v59  ;;  %10285 = vmatprep.subr.mxu0 %v11837_v45  ;;  %v11850_v42 = vmax.f32 %v11387_v3, 0.0 }
 0x548   : > { %10449 = vrcp.f32 %v8059_v37 }
 0x549   : > { %10451 = vrcp.f32 %v7968_v13 }
 0x54a   : > { %10453 = vrcp.f32 %v7975_v16 }
 0x54b   : > { %10455 = vrcp.f32 %v7982_v29 }
 0x54c   : > { %10457 = vrcp.f32 %v7989_v33 }
 0x54d   : > { %v10442_v22 = vpop.eup %10441  ;;  %10459 = vrcp.f32 %v7996_v17 }
 0x54e   : > { %v8089_v40 = vmul.f32 %v10442_v22, %v11629_v48  ;;  %v10444_v12 = vpop.eup %10443  ;;  %10461 = vrcp.f32 %v8003_v24 }
 0x54f   : > { %v10446_v38 = vpop.eup %10445  ;;  %v8076_v58 = vmul.f32 %v10444_v12, %v11595_v46 }
 0x550   : > { %v8105_v49 = vmul.f32 %v8089_v40, %v11841_v51  ;;  %v8077_v8 = vmul.f32 %v10446_v38, %v11597_v57 }
 0x552   : > { %10273 = vmatmul.mubr.msk.f32.vlgmr.msra.gmra.mxu1 %vm1726_vm3, %v8105_v49  ;;  %v8093_v57 = vmul.f32 %v8077_v8, %v11845_v14 }
 0x553   : > { %10281 = vmatpush3.msra.mxu1 %v11502_v5  ;;  %10282 = vmatprep.mubr.msk.f32.mxu1 %vm10488_vm1, %v11837_v45  ;;  %v8108_v5 = vld [vmem:[%s11791_s10] sm:$0xff] }
 0x554   : > { %10290 = vmatprep.subr.mxu1 %v11837_v45  ;;  %v10448_v48 = vpop.eup %10447 }
 0x555   : > { %v10450_v0 = vpop.eup %10449  ;;  %v8090_v32 = vmul.f32 %v10448_v48, %v11666_v28  ;;  %v8092_v28 = vmul.f32 %v8076_v58, %v11844_v52 }
 0x556   : > { %v8091_v10 = vmul.f32 %v10450_v0, %v11673_v34  ;;  %v10452_v36 = vpop.eup %10451 }
 0x557   : > { %v8106_v41 = vmul.f32 %v8090_v32, %v11842_v44  ;;  %v10454_v63 = vpop.eup %10453  ;;  %v8078_v46 = vmul.f32 %v10452_v36, %v11602_v61 }
 0x558   : > { %v8107_v4 = vmul.f32 %v8091_v10, %v11843_v54  ;;  %v10456_v34 = vpop.eup %10455  ;;  %v8079_v9 = vmul.f32 %v10454_v63, %v11604_v60  ;;  %v11847_v60 = vmax.f32 %v11357_v15, 0.0 }
 0x559   : > { %10278 = vmatmul.mubr.msk.f32.vlgmr.msra.gmra.mxu0 %vm1726_vm3, %v8106_v41  ;;  %v10458_v50 = vpop.eup %10457  ;;  %v8094_v7 = vmul.f32 %v8078_v46, %v11846_v6  ;;  %v8080_v61 = vmul.f32 %v10456_v34, %v11620_v62 }
 0x55a   : > { %10283 = vmatmul.mubr.msk.f32.vlgmr.msra.gmra.mxu1 %vm1726_vm3, %v8107_v4  ;;  %10286 = vmatpush3.msra.mxu0 %v8108_v5  ;;  %v10460_v43 = vpop.eup %10459  ;;  %v8095_v19 = vmul.f32 %v8079_v9, %v11847_v60  ;;  %v8081_v23 = vmul.f32 %v10458_v50, %v11635_v1  ;;  %v11849_v1 = vmax.f32 %v11377_v26, 0.0  ;;  %v11851_v26 = vmax.f32 %v11397_v20, 0.0 }
 0x55b   : > { %10287 = vmatprep.mubr.msk.f32.mxu0 %vm10488_vm1, %v11837_v45  ;;  %10291 = vmatpush3.msra.mxu1 %v8108_v5  ;;  %v10462_v30 = vpop.eup %10461  ;;  %v8096_v15 = vmul.f32 %v8080_v61, %v11848_v56  ;;  %v8082_v62 = vmul.f32 %v10460_v43, %v11650_v2 }
 0x55c   : > { %10292 = vmatprep.mubr.msk.f32.mxu1 %vm10488_vm1, %v11837_v45  ;;  %10295 = vmatprep.subr.mxu0 %v11837_v45  ;;  %v8097_v31 = vmul.f32 %v8081_v23, %v11849_v1  ;;  %v8083_v11 = vmul.f32 %v10462_v30, %v11655_v25 }
 0x55d   : > { %10288 = vmatmul.mubr.msk.f32.vlgmr.msra.gmra.mxu0 %vm1726_vm3, %v8092_v28  ;;  %10300 = vmatprep.subr.mxu1 %v11837_v45  ;;  %v8098_v2 = vmul.f32 %v8082_v62, %v11850_v42 }
 0x55e   : > { %10293 = vmatmul.mubr.msk.f32.vlgmr.msra.gmra.mxu1 %vm1726_vm3, %v8093_v57  ;;  %10296 = vmatpush3.msra.mxu0 %v8108_v5  ;;  %v8099_v25 = vmul.f32 %v8083_v11, %v11851_v26 }
 0x55f   : > { %10297 = vmatprep.mubr.msk.f32.mxu0 %vm10488_vm1, %v11837_v45  ;;  %10301 = vmatpush3.msra.mxu1 %v8108_v5 }
 0x560   : > { %10302 = vmatprep.mubr.msk.f32.mxu1 %vm10488_vm1, %v11837_v45  ;;  %10305 = vmatprep.subr.mxu0 %v11837_v45 }
 0x561   : > { %10298 = vmatmul.mubr.msk.f32.vlgmr.msra.gmra.mxu0 %vm1726_vm3, %v8094_v7  ;;  %10310 = vmatprep.subr.mxu1 %v11837_v45 }
 0x562   : > { %10303 = vmatmul.mubr.msk.f32.vlgmr.msra.gmra.mxu1 %vm1726_vm3, %v8095_v19  ;;  %10306 = vmatpush3.msra.mxu0 %v8108_v5 }
 0x563   : > { %10307 = vmatprep.mubr.msk.f32.mxu0 %vm10488_vm1, %v11837_v45  ;;  %10311 = vmatpush3.msra.mxu1 %v8108_v5 }
 0x564   : > { %10312 = vmatprep.mubr.msk.f32.mxu1 %vm10488_vm1, %v11837_v45  ;;  %10315 = vmatprep.subr.mxu0 %v11837_v45 }
 0x565   : > { %10308 = vmatmul.mubr.msk.f32.vlgmr.msra.gmra.mxu0 %vm1726_vm3, %v8096_v15  ;;  %10320 = vmatprep.subr.mxu1 %v11837_v45 }
 0x566   : > { %10313 = vmatmul.mubr.msk.f32.vlgmr.msra.gmra.mxu1 %vm1726_vm3, %v8097_v31  ;;  %10316 = vmatpush3.msra.mxu0 %v8108_v5 }
 0x567   : > { %10317 = vmatprep.mubr.msk.f32.mxu0 %vm10488_vm1, %v11837_v45  ;;  %10321 = vmatpush3.msra.mxu1 %v8108_v5 }
 0x568   : > { %10322 = vmatprep.mubr.msk.f32.mxu1 %vm10488_vm1, %v11837_v45 }
 0x569   : > { %10318 = vmatmul.mubr.msk.f32.vlgmr.msra.gmra.mxu0 %vm1726_vm3, %v8098_v2 }
 0x56a   : > { %10323 = vmatmul.mubr.msk.f32.vlgmr.msra.gmra.mxu1 %vm1726_vm3, %v8099_v25 }
 0x5f2   : > { %v8179_v39 = vpop.f32.mrf.mxu0 }
 0x5f4   : > { %v8252_v21 = vpop.f32.mrf.mxu1  ;;  %v10249_v59 = vpop.f32.mrf.mxu0 }
 0x5f6   : > { %v10254_v37 = vpop.f32.mrf.mxu1  ;;  %v8325_v13 = vpop.f32.mrf.mxu0 }
 0x5f8   : > { %v10259_v27 = vpop.f32.mrf.mxu0 }
 0x5fb   : > { %v8398_v35 = vpop.f32.mrf.mxu1 }
 0x5fd   : > { %v10264_v3 = vpop.f32.mrf.mxu1 }
 0x605   : > { %v8471_v16 = vpop.f32.mrf.mxu0 }
 0x607   : > { %v10269_v55 = vpop.f32.mrf.mxu0 }
 0x612   : > { %v8544_v53 = vpop.f32.mrf.mxu1 }
 0x614   : > { %v10274_v45 = vpop.f32.mrf.mxu1 }
 0x619   : > { %v8617_v29 = vpop.f32.mrf.mxu0 }
 0x61a   : > { %v8690_v20 = vpop.f32.mrf.mxu1 }
 0x61b   : > { %v10279_v18 = vpop.f32.mrf.mxu0 }
 0x61c   : > { %v10284_v22 = vpop.f32.mrf.mxu1 }
 0x61d   : > { %v8763_v33 = vpop.f32.mrf.mxu0 }
 0x61e   : > { %v8764_v40 = vadd.f32 %v8763_v33, %v8179_v39  ;;  %v8836_v17 = vpop.f32.mrf.mxu1 }
 0x61f   : > { %v8837_v51 = vadd.f32 %v8836_v17, %v8252_v21  ;;  %v10289_v49 = vpop.f32.mrf.mxu0 }
 0x620   : > { %v9285_v24 = vadd.f32 %v9538_v47, %v8764_v40  ;;  %v10294_v12 = vpop.f32.mrf.mxu1 }
 0x621   : > { %v9286_v38 = vadd.f32 %v9538_v47, %v8837_v51  ;;  %v8909_v48 = vpop.f32.mrf.mxu0 }
 0x622   : > { %9293 = vst [vmem:[%s11768_s14] sm:$0xff] %v9285_v24  ;;  %v8910_v0 = vadd.f32 %v8909_v48, %v8325_v13  ;;  %v8982_v32 = vpop.f32.mrf.mxu1 }
 0x623   : > { %9294 = vst [vmem:[%s11768_s14 + $0x8] sm:$0xff] %v9286_v38  ;;  %v8983_v10 = vadd.f32 %v8982_v32, %v8398_v35  ;;  %v10299_v44 = vpop.f32.mrf.mxu0 }
 0x624   : > { %v9287_v41 = vadd.f32 %v9538_v47, %v8910_v0  ;;  %v10304_v5 = vpop.f32.mrf.mxu1 }
 0x625   : > { %v9288_v58 = vadd.f32 %v9538_v47, %v8983_v10  ;;  %v9055_v36 = vpop.f32.mrf.mxu0 }
 0x626   : > { %9295 = vst [vmem:[%s11768_s14 + $0x10] sm:$0xff] %v9287_v41  ;;  %v9056_v54 = vadd.f32 %v9055_v36, %v8471_v16  ;;  %v9128_v4 = vpop.f32.mrf.mxu1 }
 0x627   : > { %9296 = vst [vmem:[%s11768_s14 + $0x18] sm:$0xff] %v9288_v58  ;;  %v9129_v8 = vadd.f32 %v9128_v4, %v8544_v53  ;;  %v10309_v63 = vpop.f32.mrf.mxu0 }
 0x628   : > { %v9289_v52 = vadd.f32 %v9538_v47, %v9056_v54  ;;  %v10314_v28 = vpop.f32.mrf.mxu1 }
 0x629   : > { %v9290_v46 = vadd.f32 %v9538_v47, %v9129_v8  ;;  %v9201_v34 = vpop.f32.mrf.mxu0 }
 0x62a   : > { %9297 = vst [vmem:[%s11768_s14 + $0x20] sm:$0xff] %v9289_v52  ;;  %v9202_v14 = vadd.f32 %v9201_v34, %v8617_v29  ;;  %v9274_v57 = vpop.f32.mrf.mxu1 }
 0x62b   : > { %9298 = vst [vmem:[%s11768_s14 + $0x28] sm:$0xff] %v9290_v46  ;;  %v9275_v9 = vadd.f32 %v9274_v57, %v8690_v20  ;;  %v10319_v50 = vpop.f32.mrf.mxu0 }
 0x62c   : > { %v9291_v6 = vadd.f32 %v9538_v47, %v9202_v14  ;;  %v10324_v7 = vpop.f32.mrf.mxu1 }
 0x62d   : > { %v9292_v61 = vadd.f32 %v9538_v47, %v9275_v9 }
 0x62e   : > { %9299 = vst [vmem:[%s11768_s14 + $0x30] sm:$0xff] %v9291_v6 }
 0x62f   : > { %9300 = vst [vmem:[%s11768_s14 + $0x38] sm:$0xff] %v9292_v61 }
 0x630 PF: > { %s23_s25 = sadd.s32 1, %s10485_s25  }
 0x631   : > { %p20_p4 = scmp.ge.s32.totalorder %s23_s25, 6  }
 0x633   :  { %22 = sbr.rel (!%p20_p4) target bundleno = 1 (0x1), region = 111 }

</bundles_post_ra>
